<compile_context>
chip_gen: v7x
topology: tpu7x:2x2x1
jax: 0.10.0
libtpu: 0.0.40
codegen_flags: <defaults>
</compile_context>

<pallas_src>
import jax
import jax.numpy as jnp
from jax import lax
from jax.experimental import pallas as pl
from jax.experimental.pallas import tpu as pltpu

C = 3  # proj outputs 3 channels and is added residually to x => C must be 3

# Offsets into the packed 48-float weight vector living in SMEM.
_OFF_WQ, _OFF_BQ = 0, 9
_OFF_WK, _OFF_BK = 12, 21
_OFF_WV, _OFF_BV = 24, 33
_OFF_WP, _OFF_BP = 36, 45


# --------------------------------------------------------------------------- #
# Small helpers
# --------------------------------------------------------------------------- #
def _round_up(v, m):
    return (v + m - 1) // m * m


def _softmax3(p0, p1, p2, *, approx):
    """Per-pixel softmax over the 3 channel planes (VPU max/sub/add, EUP exp)."""
    m = jnp.maximum(p0, jnp.maximum(p1, p2))
    e0, e1, e2 = jnp.exp(p0 - m), jnp.exp(p1 - m), jnp.exp(p2 - m)
    den = e0 + e1 + e2
    if approx:
        inv = pl.reciprocal(den, approx=True)      # EUP slot, local output only
        return e0 * inv, e1 * inv, e2 * inv
    return e0 / den, e1 / den, e2 / den            # exact: feeds Gram sums


def _pixel_mask(shape, base, hw):
    """1.0 for pixels whose flat index (base + row*128 + lane) < hw, else 0."""
    rows = lax.broadcasted_iota(jnp.int32, shape, 0)
    lanes = lax.broadcasted_iota(jnp.int32, shape, 1)
    return ((base + rows * 128 + lanes) < hw).astype(jnp.float32)


def _read_mat3(w_ref, off):
    return [[w_ref[off + C * i + j] for j in range(C)] for i in range(C)]


def _read_vec3(w_ref, off):
    return [w_ref[off + i] for i in range(C)]


def _pack_params(p):
    return jnp.concatenate([
        p["wq"].reshape(-1), p["bq"].reshape(-1),
        p["wk"].reshape(-1), p["bk"].reshape(-1),
        p["wv"].reshape(-1), p["bv"].reshape(-1),
        p["wp"].reshape(-1), p["bp"].reshape(-1),
    ]).astype(jnp.float32)


def _pad_planes(x, r_pad):
    """(b, C, H, W) -> lane-dense (b, C, r_pad, 128) with zero tail padding."""
    b, c, h, w = x.shape
    hw = h * w
    flat = x.reshape(b, c, hw)
    pad = r_pad * 128 - hw
    if pad:
        flat = jnp.pad(flat, ((0, 0), (0, 0), (0, pad)))
    return flat.reshape(b, c, r_pad, 128)


def _unpad(out, hw, h, w):
    b, c = out.shape[0], out.shape[1]
    return out.reshape(b, c, -1)[:, :, :hw].reshape(b, c, h, w)


def _choose_tile_rows(r, min_tr):
    """Largest lane-dense tile height with <=~12.5% padding waste; floor 16."""
    for cand in (512, 256, 128, 64, 32, 16):
        if cand < min_tr:
            continue
        if (-r) % cand <= max(min_tr, r // 8):
            return cand
    return min_tr


# --------------------------------------------------------------------------- #
# Kernels
# --------------------------------------------------------------------------- #
def _make_gram_kernel(tr, n_ts, hw, need_mask):
    """Pass 1: accumulate 6 Gram entries + 3 channel sums of softmax(x).

    Per tile everything is reduced to 9 lane-partial rows and added into a
    tiny resident (9, 128) output block — no full-plane RMW accumulator.
    """
    def kernel(x_ref, o_ref):
        t = pl.program_id(2)

        @pl.when(t == 0)
        def _():
            o_ref[...] = jnp.zeros_like(o_ref)

        p = [x_ref[ch].astype(jnp.float32) for ch in range(C)]
        x0, x1, x2 = _softmax3(*p, approx=False)
        if need_mask:
            base = (pl.program_id(1) * n_ts + t) * (tr * 128)
            msk = _pixel_mask((tr, 128), base, hw)
            x0, x1, x2 = x0 * msk, x1 * msk, x2 * msk

        parts = (x0 * x0, x0 * x1, x0 * x2,   # G00 G01 G02
                 x1 * x1, x1 * x2, x2 * x2,   # G11 G12 G22
                 x0, x1, x2)                  # m0  m1  m2
        stacked = jnp.concatenate(
            [jnp.sum(q, axis=0, keepdims=True) for q in parts], axis=0)
        o_ref[...] = o_ref[...] + stacked

    return kernel


def _apply_kernel(ad_ref, x_ref, o_ref):
    """Pass 2: y = A softmax(x) + d + x with per-batch A (9) + d (3) in SMEM."""
    base = pl.program_id(0) * 12
    p = [x_ref[ch].astype(jnp.float32) for ch in range(C)]
    xn = _softmax3(*p, approx=True)
    for co in range(C):
        acc = xn[0] * ad_ref[base + 3 * co + 0]
        acc = acc + xn[1] * ad_ref[base + 3 * co + 1]
        acc = acc + xn[2] * ad_ref[base + 3 * co + 2]
        o_ref[co] = (acc + ad_ref[base + 9 + co] + p[co]).astype(o_ref.dtype)


def _make_fused_kernel(r_pad, hw, need_mask):
    """Single-pass path: whole (C, r_pad, 128) image per batch in one block."""
    n_pix = float(hw)

    def kernel(w_ref, x_ref, o_ref):
        p = [x_ref[ch].astype(jnp.float32) for ch in range(C)]
        xn = list(_softmax3(*p, approx=False))
        if need_mask:
            msk = _pixel_mask((r_pad, 128), 0, hw)
            xn = [v * msk for v in xn]

        def tot(a):                                    # full reduce -> (1, 1)
            return jnp.sum(a, keepdims=True)

        g = [[None] * C for _ in range(C)]
        for a in range(C):
            for b2 in range(a, C):
                g[a][b2] = tot(xn[a] * xn[b2])
                g[b2][a] = g[a][b2]
        mv = [tot(xn[a]) for a in range(C)]

        wq = _read_mat3(w_ref, _OFF_WQ); bq = _read_vec3(w_ref, _OFF_BQ)
        wk = _read_mat3(w_ref, _OFF_WK); bk = _read_vec3(w_ref, _OFF_BK)
        wv = _read_mat3(w_ref, _OFF_WV); bv = _read_vec3(w_ref, _OFF_BV)
        wp = _read_mat3(w_ref, _OFF_WP); bp = _read_vec3(w_ref, _OFF_BP)

        # S = Wv G Wk^T + (Wv m) bk^T + bv (Wk m)^T + N bv bk^T
        wv_m = [sum(wv[i][a] * mv[a] for a in range(C)) for i in range(C)]
        wk_m = [sum(wk[j][a] * mv[a] for a in range(C)) for j in range(C)]
        wv_g = [[sum(wv[i][a] * g[a][j] for a in range(C)) for j in range(C)]
                for i in range(C)]
        s = [[sum(wv_g[i][a] * wk[j][a] for a in range(C))
              + wv_m[i] * bk[j] + bv[i] * wk_m[j] + n_pix * bv[i] * bk[j]
              for j in range(C)] for i in range(C)]

        # A = Wp S Wq ;  d = Wp S bq + bp
        wp_s = [[sum(wp[o][i] * s[i][j] for i in range(C)) for j in range(C)]
                for o in range(C)]
        amat = [[sum(wp_s[o][j] * wq[j][c2] for j in range(C)) for c2 in range(C)]
                for o in range(C)]
        dvec = [sum(wp_s[o][j] * bq[j] for j in range(C)) + bp[o]
                for o in range(C)]

        for o in range(C):
            acc = xn[0] * amat[o][0] + xn[1] * amat[o][1] + xn[2] * amat[o][2]
            o_ref[o] = (acc + dvec[o] + p[o]).astype(o_ref.dtype)

    return kernel


# --------------------------------------------------------------------------- #
# Wrapper
# --------------------------------------------------------------------------- #
def self_attention_pallas(x, params, *, fused_row_limit=512):
    b, c, h, w = x.shape
    assert c == C, "SelfAttention residual broadcast requires channels == 3"
    hw = h * w
    itemsize = x.dtype.itemsize
    # Minimum tile rows: 8 for f32, 16 for bf16, 32 for int8/fp8; floor at 16.
    min_tr = max({4: 8, 2: 16, 1: 32}.get(itemsize, 8), 16)
    r = pl.cdiv(hw, 128)
    wpack = _pack_params(params)

    # ---------------- Fused single-pass path (image fits in VMEM) -----------
    r_f = _round_up(max(r, min_tr), min_tr)
    if r_f <= fused_row_limit:
        r_pad = r_f
        need_mask = (r_pad * 128 != hw)
        xr = _pad_planes(x, r_pad)
        npix = b * r_pad * 128
        out = pl.pallas_call(
            _make_fused_kernel(r_pad, hw, need_mask),
            out_shape=jax.ShapeDtypeStruct((b, C, r_pad, 128), x.dtype),
            grid_spec=pltpu.PrefetchScalarGridSpec(
                num_scalar_prefetch=0,
                grid=(b,),
                in_specs=[
                    pl.BlockSpec(memory_space=pltpu.MemorySpace.SMEM),
                    pl.BlockSpec((None, C, r_pad, 128), lambda i: (i, 0, 0, 0)),
                ],
                out_specs=pl.BlockSpec((None, C, r_pad, 128),
                                       lambda i: (i, 0, 0, 0)),
            ),
            compiler_params=pltpu.CompilerParams(
                dimension_semantics=("parallel",),
                vmem_limit_bytes=32 * 1024 * 1024),
            input_output_aliases={1: 0},
            cost_estimate=pl.CostEstimate(
                flops=int(npix * 45),
                transcendentals=int(npix * 4),
                bytes_accessed=int(2 * b * C * r_pad * 128 * itemsize)),
        )(wpack, xr)
        return _unpad(out, hw, h, w)

    # ---------------- Two-pass tiled path (large images) --------------------
    tr = _choose_tile_rows(r, min_tr)
    split = 2 if b < 2 else 1        # keep both v7x TensorCores busy at b == 1
    n_ts = pl.cdiv(r, tr * split)
    r_pad = n_ts * tr * split
    need_mask = (r_pad * 128 != hw)
    xr = _pad_planes(x, r_pad)
    npix = b * r_pad * 128

    # Pass 1: Gram + channel sums of softmax(x), reduced in-kernel.
    gm = pl.pallas_call(
        _make_gram_kernel(tr, n_ts, hw, need_mask),
        out_shape=jax.ShapeDtypeStruct((b, split, 9, 128), jnp.float32),
        grid_spec=pltpu.PrefetchScalarGridSpec(
            num_scalar_prefetch=0,
            grid=(b, split, n_ts),
            in_specs=[pl.BlockSpec(
                (None, C, tr, 128),
                lambda i, cs, t: (i, 0, cs * n_ts + t, 0))],
            out_specs=pl.BlockSpec((None, None, 9, 128),
                                   lambda i, cs, t: (i, cs, 0, 0)),
        ),
        compiler_params=pltpu.CompilerParams(
            dimension_semantics=("parallel", "parallel", "arbitrary")),
        cost_estimate=pl.CostEstimate(
            flops=int(npix * 35),
            transcendentals=int(npix * 4),
            bytes_accessed=int(b * C * r_pad * 128 * itemsize
                               + b * split * 9 * 128 * 4)),
    )(xr)

    # Tiny host-side combine: G, m -> S -> per-batch A (3x3), d (3).
    hp = lax.Precision.HIGHEST
    gm9 = jnp.sum(gm, axis=(1, 3))                       # (b, 9)
    g6, mvec = gm9[:, :6], gm9[:, 6:9]
    G = jnp.stack([
        jnp.stack([g6[:, 0], g6[:, 1], g6[:, 2]], axis=-1),
        jnp.stack([g6[:, 1], g6[:, 3], g6[:, 4]], axis=-1),
        jnp.stack([g6[:, 2], g6[:, 4], g6[:, 5]], axis=-1)], axis=1)
    wq, bq = params["wq"], params["bq"].reshape(-1)
    wk, bk = params["wk"], params["bk"].reshape(-1)
    wv, bv = params["wv"], params["bv"].reshape(-1)
    wp, bp = params["wp"], params["bp"].reshape(-1)
    S = (jnp.einsum("pa,nab,qb->npq", wv, G, wk, precision=hp)
         + jnp.einsum("pa,na,q->npq", wv, mvec, bk, precision=hp)
         + jnp.einsum("p,qb,nb->npq", bv, wk, mvec, precision=hp)
         + float(hw) * jnp.einsum("p,q->pq", bv, bk, precision=hp)[None])
    A = jnp.einsum("op,npq,qc->noc", wp, S, wq, precision=hp)        # (b,3,3)
    d = jnp.einsum("op,npq,q->no", wp, S, bq, precision=hp) + bp[None]
    ad = jnp.concatenate([A.reshape(b, 9), d], axis=1).reshape(-1)
    ad = ad.astype(jnp.float32)                                      # (b*12,)

    # Pass 2: stream y = A softmax(x) + d + x (both grid axes parallel).
    n_t2 = r_pad // tr
    out = pl.pallas_call(
        _apply_kernel,
        out_shape=jax.ShapeDtypeStruct((b, C, r_pad, 128), x.dtype),
        grid_spec=pltpu.PrefetchScalarGridSpec(
            num_scalar_prefetch=0,
            grid=(b, n_t2),
            in_specs=[
                pl.BlockSpec(memory_space=pltpu.MemorySpace.SMEM),
                pl.BlockSpec((None, C, tr, 128), lambda i, t: (i, 0, t, 0)),
            ],
            out_specs=pl.BlockSpec((None, C, tr, 128), lambda i, t: (i, 0, t, 0)),
        ),
        compiler_params=pltpu.CompilerParams(
            dimension_semantics=("parallel", "parallel")),
        input_output_aliases={1: 0},
        cost_estimate=pl.CostEstimate(
            flops=int(npix * 30),
            transcendentals=int(npix * 4),
            bytes_accessed=int(2 * b * C * r_pad * 128 * itemsize)),
    )(ad, xr)
    return _unpad(out, hw, h, w)


# --------------------------------------------------------------------------- #
# Params / reference / test
# --------------------------------------------------------------------------- #
def init_params(key, channels):
    # PyTorch Conv2d default init: U(-1/sqrt(fan_in), 1/sqrt(fan_in)), fan_in=C
    bound = 1.0 / jnp.sqrt(jnp.float32(channels))
    keys = jax.random.split(key, 8)
    u = lambda k, shp: jax.random.uniform(k, shp, jnp.float32, -bound, bound)
    return {
        "wq": u(keys[0], (channels, channels)), "bq": u(keys[1], (channels, 1)),
        "wk": u(keys[2], (channels, channels)), "bk": u(keys[3], (channels, 1)),
        "wv": u(keys[4], (channels, channels)), "bv": u(keys[5], (channels, 1)),
        "wp": u(keys[6], (3, channels)),        "bp": u(keys[7], (3, 1)),
    }


def ref_self_attention(x, p):
    # Pure-JAX reference mirroring the PyTorch forward exactly (keeps the
    # quadratic HW x HW attention so the re-associated kernels are checked
    # against the original summation order).  HIGHEST precision so the
    # reference itself is not perturbed by bf16 MXU passes.
    hp = lax.Precision.HIGHEST
    b, c, h, w = x.shape
    xn = jax.nn.softmax(x, axis=1).reshape(b, c, h * w)
    q = jnp.einsum("oc,bcp->bop", p["wq"], xn, precision=hp) + p["bq"][None]
    k = jnp.einsum("oc,bcp->bop", p["wk"], xn, precision=hp) + p["bk"][None]
    v = jnp.einsum("oc,bcp->bop", p["wv"], xn, precision=hp) + p["bv"][None]
    attn = jnp.einsum("bcp,bcq->bpq", q, k, precision=hp)     # Q^T K
    out = jnp.einsum("bcq,bpq->bcp", v, attn, precision=hp)   # V attn^T
    proj = jnp.einsum("oc,bcp->bop", p["wp"], out, precision=hp) + p["bp"][None]
    return proj.reshape(b, 3, h, w) + x


def _check(tag, y, y_ref):
    assert y.shape == y_ref.shape, (tag, y.shape, y_ref.shape)
    scale = float(jnp.max(jnp.abs(y_ref)))
    err = float(jnp.max(jnp.abs(y - y_ref)))
    # Approx EUP reciprocal (streaming pass only) and re-associated summation
    # order perturb results slightly; genuine bugs produce O(scale) errors.
    assert err <= 1e-2 * scale + 1e-3, f"{tag}: max_err={err} scale={scale}"


if __name__ == "__main__":
    key = jax.random.PRNGKey(0)
    kp, k1, k2, k3 = jax.random.split(key, 4)
    params = init_params(kp, C)

    # Case 1 — fused single-pass path, batch 2, 16x16.
    x1 = jax.random.normal(k1, (2, C, 16, 16), jnp.float32)
    y1 = self_attention_pallas(x1, params)
    jax.block_until_ready(y1)
    _check("fused", y1, ref_self_attention(x1, params))

    # Case 2 — H*W not a multiple of 128: padded + masked tail, fused path.
    x2 = jax.random.normal(k2, (1, C, 10, 10), jnp.float32)
    y2 = self_attention_pallas(x2, params)
    jax.block_until_ready(y2)
    _check("fused_masked", y2, ref_self_attention(x2, params))

    # Case 3 — force the two-pass tiled path (also exercises the b==1 core
    # split for v7x and fully-masked padding tiles).
    x3 = jax.random.normal(k3, (1, C, 48, 48), jnp.float32)
    y3 = self_attention_pallas(x3, params, fused_row_limit=0)
    jax.block_until_ready(y3)
    _check("two_pass", y3, ref_self_attention(x3, params))

    print("KERNEL_OK")
</pallas_src>

<mosaic_0001>
module attributes {stable_mosaic.version = 11 : i64} {
  func.func @kernel(%arg0: i32, %arg1: memref<48xf32, #tpu.memory_space<smem>>, %arg2: memref<1x3x16x128xf32, #tpu.memory_space<vmem>>, %arg3: memref<1x3x16x128xf32, #tpu.memory_space<vmem>>) attributes {dimension_semantics = [#tpu.dimension_semantics<parallel>], iteration_bounds = array<i64: 2>, scalar_prefetch = 0 : i64, scratch_operands = 0 : i64, tpu.core_type = #tpu.core_type<tc>, window_params = [{transform_indices = @transform_0, window_bounds = array<i64: 48>}, {transform_indices = @transform_1, window_bounds = array<i64: 1, 3, 16, 128>}, {transform_indices = @transform_2, window_bounds = array<i64: 1, 3, 16, 128>}]} {
    %c0 = arith.constant 0 : index
    %c0_0 = arith.constant 0 : index
    %c0_1 = arith.constant 0 : index
    %c0_2 = arith.constant 0 : index
    %0 = vector.load %arg2[%c0, %c0_0, %c0_1, %c0_2] : memref<1x3x16x128xf32, #tpu.memory_space<vmem>>, vector<1x1x16x128xf32>
    %1 = vector.shape_cast %0 : vector<1x1x16x128xf32> to vector<16x128xf32>
    %c0_3 = arith.constant 0 : index
    %c1 = arith.constant 1 : index
    %c0_4 = arith.constant 0 : index
    %c0_5 = arith.constant 0 : index
    %2 = vector.load %arg2[%c0_3, %c1, %c0_4, %c0_5] : memref<1x3x16x128xf32, #tpu.memory_space<vmem>>, vector<1x1x16x128xf32>
    %3 = vector.shape_cast %2 : vector<1x1x16x128xf32> to vector<16x128xf32>
    %c0_6 = arith.constant 0 : index
    %c2 = arith.constant 2 : index
    %c0_7 = arith.constant 0 : index
    %c0_8 = arith.constant 0 : index
    %4 = vector.load %arg2[%c0_6, %c2, %c0_7, %c0_8] : memref<1x3x16x128xf32, #tpu.memory_space<vmem>>, vector<1x1x16x128xf32>
    %5 = vector.shape_cast %4 : vector<1x1x16x128xf32> to vector<16x128xf32>
    %6 = arith.maximumf %3, %5 : vector<16x128xf32>
    %7 = arith.maximumf %1, %6 : vector<16x128xf32>
    %8 = arith.subf %1, %7 : vector<16x128xf32>
    %9 = math.exp %8 : vector<16x128xf32>
    %10 = arith.subf %3, %7 : vector<16x128xf32>
    %11 = math.exp %10 : vector<16x128xf32>
    %12 = arith.subf %5, %7 : vector<16x128xf32>
    %13 = math.exp %12 : vector<16x128xf32>
    %14 = arith.addf %9, %11 : vector<16x128xf32>
    %15 = arith.addf %14, %13 : vector<16x128xf32>
    %16 = arith.divf %9, %15 : vector<16x128xf32>
    %17 = arith.divf %11, %15 : vector<16x128xf32>
    %18 = arith.divf %13, %15 : vector<16x128xf32>
    %19 = tpu.iota {dimensions = array<i32: 0>} : vector<16x128xi32>
    %20 = tpu.iota {dimensions = array<i32: 1>} : vector<16x128xi32>
    %c128_i32 = arith.constant 128 : i32
    %21 = vector.broadcast %c128_i32 : i32 to vector<16x128xi32>
    %22 = arith.muli %19, %21 : vector<16x128xi32>
    %c0_i32 = arith.constant 0 : i32
    %23 = vector.broadcast %c0_i32 : i32 to vector<16x128xi32>
    %24 = arith.addi %23, %22 : vector<16x128xi32>
    %25 = arith.addi %24, %20 : vector<16x128xi32>
    %c256_i32 = arith.constant 256 : i32
    %26 = vector.broadcast %c256_i32 : i32 to vector<16x128xi32>
    %27 = arith.cmpi slt, %25, %26 : vector<16x128xi32>
    %28 = arith.extui %27 : vector<16x128xi1> to vector<16x128xi32>
    %29 = arith.sitofp %28 : vector<16x128xi32> to vector<16x128xf32>
    %30 = arith.mulf %16, %29 : vector<16x128xf32>
    %31 = arith.mulf %17, %29 : vector<16x128xf32>
    %32 = arith.mulf %18, %29 : vector<16x128xf32>
    %33 = arith.mulf %30, %30 : vector<16x128xf32>
    %34 = vector.shape_cast %33 : vector<16x128xf32> to vector<1x16x128xf32>
    %cst = arith.constant dense<0.000000e+00> : vector<1xf32>
    %35 = vector.multi_reduction <add>, %34, %cst [1, 2] : vector<1x16x128xf32> to vector<1xf32>
    %36 = vector.shape_cast %35 : vector<1xf32> to vector<1x1x1xf32>
    %37 = vector.extract %36[0, 0, 0] : f32 from vector<1x1x1xf32>
    %38 = vector.broadcast %37 : f32 to vector<1x1xf32>
    %39 = arith.mulf %30, %31 : vector<16x128xf32>
    %40 = vector.shape_cast %39 : vector<16x128xf32> to vector<1x16x128xf32>
    %cst_9 = arith.constant dense<0.000000e+00> : vector<1xf32>
    %41 = vector.multi_reduction <add>, %40, %cst_9 [1, 2] : vector<1x16x128xf32> to vector<1xf32>
    %42 = vector.shape_cast %41 : vector<1xf32> to vector<1x1x1xf32>
    %43 = vector.extract %42[0, 0, 0] : f32 from vector<1x1x1xf32>
    %44 = vector.broadcast %43 : f32 to vector<1x1xf32>
    %45 = arith.mulf %30, %32 : vector<16x128xf32>
    %46 = vector.shape_cast %45 : vector<16x128xf32> to vector<1x16x128xf32>
    %cst_10 = arith.constant dense<0.000000e+00> : vector<1xf32>
    %47 = vector.multi_reduction <add>, %46, %cst_10 [1, 2] : vector<1x16x128xf32> to vector<1xf32>
    %48 = vector.shape_cast %47 : vector<1xf32> to vector<1x1x1xf32>
    %49 = vector.extract %48[0, 0, 0] : f32 from vector<1x1x1xf32>
    %50 = vector.broadcast %49 : f32 to vector<1x1xf32>
    %51 = arith.mulf %31, %31 : vector<16x128xf32>
    %52 = vector.shape_cast %51 : vector<16x128xf32> to vector<1x16x128xf32>
    %cst_11 = arith.constant dense<0.000000e+00> : vector<1xf32>
    %53 = vector.multi_reduction <add>, %52, %cst_11 [1, 2] : vector<1x16x128xf32> to vector<1xf32>
    %54 = vector.shape_cast %53 : vector<1xf32> to vector<1x1x1xf32>
    %55 = vector.extract %54[0, 0, 0] : f32 from vector<1x1x1xf32>
    %56 = vector.broadcast %55 : f32 to vector<1x1xf32>
    %57 = arith.mulf %31, %32 : vector<16x128xf32>
    %58 = vector.shape_cast %57 : vector<16x128xf32> to vector<1x16x128xf32>
    %cst_12 = arith.constant dense<0.000000e+00> : vector<1xf32>
    %59 = vector.multi_reduction <add>, %58, %cst_12 [1, 2] : vector<1x16x128xf32> to vector<1xf32>
    %60 = vector.shape_cast %59 : vector<1xf32> to vector<1x1x1xf32>
    %61 = vector.extract %60[0, 0, 0] : f32 from vector<1x1x1xf32>
    %62 = vector.broadcast %61 : f32 to vector<1x1xf32>
    %63 = arith.mulf %32, %32 : vector<16x128xf32>
    %64 = vector.shape_cast %63 : vector<16x128xf32> to vector<1x16x128xf32>
    %cst_13 = arith.constant dense<0.000000e+00> : vector<1xf32>
    %65 = vector.multi_reduction <add>, %64, %cst_13 [1, 2] : vector<1x16x128xf32> to vector<1xf32>
    %66 = vector.shape_cast %65 : vector<1xf32> to vector<1x1x1xf32>
    %67 = vector.extract %66[0, 0, 0] : f32 from vector<1x1x1xf32>
    %68 = vector.broadcast %67 : f32 to vector<1x1xf32>
    %69 = vector.shape_cast %30 : vector<16x128xf32> to vector<1x16x128xf32>
    %cst_14 = arith.constant dense<0.000000e+00> : vector<1xf32>
    %70 = vector.multi_reduction <add>, %69, %cst_14 [1, 2] : vector<1x16x128xf32> to vector<1xf32>
    %71 = vector.shape_cast %70 : vector<1xf32> to vector<1x1x1xf32>
    %72 = vector.extract %71[0, 0, 0] : f32 from vector<1x1x1xf32>
    %73 = vector.broadcast %72 : f32 to vector<1x1xf32>
    %74 = vector.shape_cast %31 : vector<16x128xf32> to vector<1x16x128xf32>
    %cst_15 = arith.constant dense<0.000000e+00> : vector<1xf32>
    %75 = vector.multi_reduction <add>, %74, %cst_15 [1, 2] : vector<1x16x128xf32> to vector<1xf32>
    %76 = vector.shape_cast %75 : vector<1xf32> to vector<1x1x1xf32>
    %77 = vector.extract %76[0, 0, 0] : f32 from vector<1x1x1xf32>
    %78 = vector.broadcast %77 : f32 to vector<1x1xf32>
    %79 = vector.shape_cast %32 : vector<16x128xf32> to vector<1x16x128xf32>
    %cst_16 = arith.constant dense<0.000000e+00> : vector<1xf32>
    %80 = vector.multi_reduction <add>, %79, %cst_16 [1, 2] : vector<1x16x128xf32> to vector<1xf32>
    %81 = vector.shape_cast %80 : vector<1xf32> to vector<1x1x1xf32>
    %82 = vector.extract %81[0, 0, 0] : f32 from vector<1x1x1xf32>
    %83 = vector.broadcast %82 : f32 to vector<1x1xf32>
    %c0_17 = arith.constant 0 : index
    %84 = memref.load %arg1[%c0_17] : memref<48xf32, #tpu.memory_space<smem>>
    %c1_18 = arith.constant 1 : index
    %85 = memref.load %arg1[%c1_18] : memref<48xf32, #tpu.memory_space<smem>>
    %c2_19 = arith.constant 2 : index
    %86 = memref.load %arg1[%c2_19] : memref<48xf32, #tpu.memory_space<smem>>
    %c3 = arith.constant 3 : index
    %87 = memref.load %arg1[%c3] : memref<48xf32, #tpu.memory_space<smem>>
    %c4 = arith.constant 4 : index
    %88 = memref.load %arg1[%c4] : memref<48xf32, #tpu.memory_space<smem>>
    %c5 = arith.constant 5 : index
    %89 = memref.load %arg1[%c5] : memref<48xf32, #tpu.memory_space<smem>>
    %c6 = arith.constant 6 : index
    %90 = memref.load %arg1[%c6] : memref<48xf32, #tpu.memory_space<smem>>
    %c7 = arith.constant 7 : index
    %91 = memref.load %arg1[%c7] : memref<48xf32, #tpu.memory_space<smem>>
    %c8 = arith.constant 8 : index
    %92 = memref.load %arg1[%c8] : memref<48xf32, #tpu.memory_space<smem>>
    %c9 = arith.constant 9 : index
    %93 = memref.load %arg1[%c9] : memref<48xf32, #tpu.memory_space<smem>>
    %c10 = arith.constant 10 : index
    %94 = memref.load %arg1[%c10] : memref<48xf32, #tpu.memory_space<smem>>
    %c11 = arith.constant 11 : index
    %95 = memref.load %arg1[%c11] : memref<48xf32, #tpu.memory_space<smem>>
    %c12 = arith.constant 12 : index
    %96 = memref.load %arg1[%c12] : memref<48xf32, #tpu.memory_space<smem>>
    %c13 = arith.constant 13 : index
    %97 = memref.load %arg1[%c13] : memref<48xf32, #tpu.memory_space<smem>>
    %c14 = arith.constant 14 : index
    %98 = memref.load %arg1[%c14] : memref<48xf32, #tpu.memory_space<smem>>
    %c15 = arith.constant 15 : index
    %99 = memref.load %arg1[%c15] : memref<48xf32, #tpu.memory_space<smem>>
    %c16 = arith.constant 16 : index
    %100 = memref.load %arg1[%c16] : memref<48xf32, #tpu.memory_space<smem>>
    %c17 = arith.constant 17 : index
    %101 = memref.load %arg1[%c17] : memref<48xf32, #tpu.memory_space<smem>>
    %c18 = arith.constant 18 : index
    %102 = memref.load %arg1[%c18] : memref<48xf32, #tpu.memory_space<smem>>
    %c19 = arith.constant 19 : index
    %103 = memref.load %arg1[%c19] : memref<48xf32, #tpu.memory_space<smem>>
    %c20 = arith.constant 20 : index
    %104 = memref.load %arg1[%c20] : memref<48xf32, #tpu.memory_space<smem>>
    %c21 = arith.constant 21 : index
    %105 = memref.load %arg1[%c21] : memref<48xf32, #tpu.memory_space<smem>>
    %c22 = arith.constant 22 : index
    %106 = memref.load %arg1[%c22] : memref<48xf32, #tpu.memory_space<smem>>
    %c23 = arith.constant 23 : index
    %107 = memref.load %arg1[%c23] : memref<48xf32, #tpu.memory_space<smem>>
    %c24 = arith.constant 24 : index
    %108 = memref.load %arg1[%c24] : memref<48xf32, #tpu.memory_space<smem>>
    %c25 = arith.constant 25 : index
    %109 = memref.load %arg1[%c25] : memref<48xf32, #tpu.memory_space<smem>>
    %c26 = arith.constant 26 : index
    %110 = memref.load %arg1[%c26] : memref<48xf32, #tpu.memory_space<smem>>
    %c27 = arith.constant 27 : index
    %111 = memref.load %arg1[%c27] : memref<48xf32, #tpu.memory_space<smem>>
    %c28 = arith.constant 28 : index
    %112 = memref.load %arg1[%c28] : memref<48xf32, #tpu.memory_space<smem>>
    %c29 = arith.constant 29 : index
    %113 = memref.load %arg1[%c29] : memref<48xf32, #tpu.memory_space<smem>>
    %c30 = arith.constant 30 : index
    %114 = memref.load %arg1[%c30] : memref<48xf32, #tpu.memory_space<smem>>
    %c31 = arith.constant 31 : index
    %115 = memref.load %arg1[%c31] : memref<48xf32, #tpu.memory_space<smem>>
    %c32 = arith.constant 32 : index
    %116 = memref.load %arg1[%c32] : memref<48xf32, #tpu.memory_space<smem>>
    %c33 = arith.constant 33 : index
    %117 = memref.load %arg1[%c33] : memref<48xf32, #tpu.memory_space<smem>>
    %c34 = arith.constant 34 : index
    %118 = memref.load %arg1[%c34] : memref<48xf32, #tpu.memory_space<smem>>
    %c35 = arith.constant 35 : index
    %119 = memref.load %arg1[%c35] : memref<48xf32, #tpu.memory_space<smem>>
    %c36 = arith.constant 36 : index
    %120 = memref.load %arg1[%c36] : memref<48xf32, #tpu.memory_space<smem>>
    %c37 = arith.constant 37 : index
    %121 = memref.load %arg1[%c37] : memref<48xf32, #tpu.memory_space<smem>>
    %c38 = arith.constant 38 : index
    %122 = memref.load %arg1[%c38] : memref<48xf32, #tpu.memory_space<smem>>
    %c39 = arith.constant 39 : index
    %123 = memref.load %arg1[%c39] : memref<48xf32, #tpu.memory_space<smem>>
    %c40 = arith.constant 40 : index
    %124 = memref.load %arg1[%c40] : memref<48xf32, #tpu.memory_space<smem>>
    %c41 = arith.constant 41 : index
    %125 = memref.load %arg1[%c41] : memref<48xf32, #tpu.memory_space<smem>>
    %c42 = arith.constant 42 : index
    %126 = memref.load %arg1[%c42] : memref<48xf32, #tpu.memory_space<smem>>
    %c43 = arith.constant 43 : index
    %127 = memref.load %arg1[%c43] : memref<48xf32, #tpu.memory_space<smem>>
    %c44 = arith.constant 44 : index
    %128 = memref.load %arg1[%c44] : memref<48xf32, #tpu.memory_space<smem>>
    %c45 = arith.constant 45 : index
    %129 = memref.load %arg1[%c45] : memref<48xf32, #tpu.memory_space<smem>>
    %c46 = arith.constant 46 : index
    %130 = memref.load %arg1[%c46] : memref<48xf32, #tpu.memory_space<smem>>
    %c47 = arith.constant 47 : index
    %131 = memref.load %arg1[%c47] : memref<48xf32, #tpu.memory_space<smem>>
    %132 = vector.broadcast %108 : f32 to vector<1x1xf32>
    %133 = arith.mulf %132, %73 : vector<1x1xf32>
    %cst_20 = arith.constant 0.000000e+00 : f32
    %134 = vector.broadcast %cst_20 : f32 to vector<1x1xf32>
    %135 = arith.addf %134, %133 : vector<1x1xf32>
    %136 = vector.broadcast %109 : f32 to vector<1x1xf32>
    %137 = arith.mulf %136, %78 : vector<1x1xf32>
    %138 = arith.addf %135, %137 : vector<1x1xf32>
    %139 = vector.broadcast %110 : f32 to vector<1x1xf32>
    %140 = arith.mulf %139, %83 : vector<1x1xf32>
    %141 = arith.addf %138, %140 : vector<1x1xf32>
    %142 = vector.broadcast %111 : f32 to vector<1x1xf32>
    %143 = arith.mulf %142, %73 : vector<1x1xf32>
    %cst_21 = arith.constant 0.000000e+00 : f32
    %144 = vector.broadcast %cst_21 : f32 to vector<1x1xf32>
    %145 = arith.addf %144, %143 : vector<1x1xf32>
    %146 = vector.broadcast %112 : f32 to vector<1x1xf32>
    %147 = arith.mulf %146, %78 : vector<1x1xf32>
    %148 = arith.addf %145, %147 : vector<1x1xf32>
    %149 = vector.broadcast %113 : f32 to vector<1x1xf32>
    %150 = arith.mulf %149, %83 : vector<1x1xf32>
    %151 = arith.addf %148, %150 : vector<1x1xf32>
    %152 = vector.broadcast %114 : f32 to vector<1x1xf32>
    %153 = arith.mulf %152, %73 : vector<1x1xf32>
    %cst_22 = arith.constant 0.000000e+00 : f32
    %154 = vector.broadcast %cst_22 : f32 to vector<1x1xf32>
    %155 = arith.addf %154, %153 : vector<1x1xf32>
    %156 = vector.broadcast %115 : f32 to vector<1x1xf32>
    %157 = arith.mulf %156, %78 : vector<1x1xf32>
    %158 = arith.addf %155, %157 : vector<1x1xf32>
    %159 = vector.broadcast %116 : f32 to vector<1x1xf32>
    %160 = arith.mulf %159, %83 : vector<1x1xf32>
    %161 = arith.addf %158, %160 : vector<1x1xf32>
    %162 = vector.broadcast %96 : f32 to vector<1x1xf32>
    %163 = arith.mulf %162, %73 : vector<1x1xf32>
    %cst_23 = arith.constant 0.000000e+00 : f32
    %164 = vector.broadcast %cst_23 : f32 to vector<1x1xf32>
    %165 = arith.addf %164, %163 : vector<1x1xf32>
    %166 = vector.broadcast %97 : f32 to vector<1x1xf32>
    %167 = arith.mulf %166, %78 : vector<1x1xf32>
    %168 = arith.addf %165, %167 : vector<1x1xf32>
    %169 = vector.broadcast %98 : f32 to vector<1x1xf32>
    %170 = arith.mulf %169, %83 : vector<1x1xf32>
    %171 = arith.addf %168, %170 : vector<1x1xf32>
    %172 = vector.broadcast %99 : f32 to vector<1x1xf32>
    %173 = arith.mulf %172, %73 : vector<1x1xf32>
    %cst_24 = arith.constant 0.000000e+00 : f32
    %174 = vector.broadcast %cst_24 : f32 to vector<1x1xf32>
    %175 = arith.addf %174, %173 : vector<1x1xf32>
    %176 = vector.broadcast %100 : f32 to vector<1x1xf32>
    %177 = arith.mulf %176, %78 : vector<1x1xf32>
    %178 = arith.addf %175, %177 : vector<1x1xf32>
    %179 = vector.broadcast %101 : f32 to vector<1x1xf32>
    %180 = arith.mulf %179, %83 : vector<1x1xf32>
    %181 = arith.addf %178, %180 : vector<1x1xf32>
    %182 = vector.broadcast %102 : f32 to vector<1x1xf32>
    %183 = arith.mulf %182, %73 : vector<1x1xf32>
    %cst_25 = arith.constant 0.000000e+00 : f32
    %184 = vector.broadcast %cst_25 : f32 to vector<1x1xf32>
    %185 = arith.addf %184, %183 : vector<1x1xf32>
    %186 = vector.broadcast %103 : f32 to vector<1x1xf32>
    %187 = arith.mulf %186, %78 : vector<1x1xf32>
    %188 = arith.addf %185, %187 : vector<1x1xf32>
    %189 = vector.broadcast %104 : f32 to vector<1x1xf32>
    %190 = arith.mulf %189, %83 : vector<1x1xf32>
    %191 = arith.addf %188, %190 : vector<1x1xf32>
    %192 = vector.broadcast %108 : f32 to vector<1x1xf32>
    %193 = arith.mulf %192, %38 : vector<1x1xf32>
    %cst_26 = arith.constant 0.000000e+00 : f32
    %194 = vector.broadcast %cst_26 : f32 to vector<1x1xf32>
    %195 = arith.addf %194, %193 : vector<1x1xf32>
    %196 = vector.broadcast %109 : f32 to vector<1x1xf32>
    %197 = arith.mulf %196, %44 : vector<1x1xf32>
    %198 = arith.addf %195, %197 : vector<1x1xf32>
    %199 = vector.broadcast %110 : f32 to vector<1x1xf32>
    %200 = arith.mulf %199, %50 : vector<1x1xf32>
    %201 = arith.addf %198, %200 : vector<1x1xf32>
    %202 = vector.broadcast %108 : f32 to vector<1x1xf32>
    %203 = arith.mulf %202, %44 : vector<1x1xf32>
    %cst_27 = arith.constant 0.000000e+00 : f32
    %204 = vector.broadcast %cst_27 : f32 to vector<1x1xf32>
    %205 = arith.addf %204, %203 : vector<1x1xf32>
    %206 = vector.broadcast %109 : f32 to vector<1x1xf32>
    %207 = arith.mulf %206, %56 : vector<1x1xf32>
    %208 = arith.addf %205, %207 : vector<1x1xf32>
    %209 = vector.broadcast %110 : f32 to vector<1x1xf32>
    %210 = arith.mulf %209, %62 : vector<1x1xf32>
    %211 = arith.addf %208, %210 : vector<1x1xf32>
    %212 = vector.broadcast %108 : f32 to vector<1x1xf32>
    %213 = arith.mulf %212, %50 : vector<1x1xf32>
    %cst_28 = arith.constant 0.000000e+00 : f32
    %214 = vector.broadcast %cst_28 : f32 to vector<1x1xf32>
    %215 = arith.addf %214, %213 : vector<1x1xf32>
    %216 = vector.broadcast %109 : f32 to vector<1x1xf32>
    %217 = arith.mulf %216, %62 : vector<1x1xf32>
    %218 = arith.addf %215, %217 : vector<1x1xf32>
    %219 = vector.broadcast %110 : f32 to vector<1x1xf32>
    %220 = arith.mulf %219, %68 : vector<1x1xf32>
    %221 = arith.addf %218, %220 : vector<1x1xf32>
    %222 = vector.broadcast %111 : f32 to vector<1x1xf32>
    %223 = arith.mulf %222, %38 : vector<1x1xf32>
    %cst_29 = arith.constant 0.000000e+00 : f32
    %224 = vector.broadcast %cst_29 : f32 to vector<1x1xf32>
    %225 = arith.addf %224, %223 : vector<1x1xf32>
    %226 = vector.broadcast %112 : f32 to vector<1x1xf32>
    %227 = arith.mulf %226, %44 : vector<1x1xf32>
    %228 = arith.addf %225, %227 : vector<1x1xf32>
    %229 = vector.broadcast %113 : f32 to vector<1x1xf32>
    %230 = arith.mulf %229, %50 : vector<1x1xf32>
    %231 = arith.addf %228, %230 : vector<1x1xf32>
    %232 = vector.broadcast %111 : f32 to vector<1x1xf32>
    %233 = arith.mulf %232, %44 : vector<1x1xf32>
    %cst_30 = arith.constant 0.000000e+00 : f32
    %234 = vector.broadcast %cst_30 : f32 to vector<1x1xf32>
    %235 = arith.addf %234, %233 : vector<1x1xf32>
    %236 = vector.broadcast %112 : f32 to vector<1x1xf32>
    %237 = arith.mulf %236, %56 : vector<1x1xf32>
    %238 = arith.addf %235, %237 : vector<1x1xf32>
    %239 = vector.broadcast %113 : f32 to vector<1x1xf32>
    %240 = arith.mulf %239, %62 : vector<1x1xf32>
    %241 = arith.addf %238, %240 : vector<1x1xf32>
    %242 = vector.broadcast %111 : f32 to vector<1x1xf32>
    %243 = arith.mulf %242, %50 : vector<1x1xf32>
    %cst_31 = arith.constant 0.000000e+00 : f32
    %244 = vector.broadcast %cst_31 : f32 to vector<1x1xf32>
    %245 = arith.addf %244, %243 : vector<1x1xf32>
    %246 = vector.broadcast %112 : f32 to vector<1x1xf32>
    %247 = arith.mulf %246, %62 : vector<1x1xf32>
    %248 = arith.addf %245, %247 : vector<1x1xf32>
    %249 = vector.broadcast %113 : f32 to vector<1x1xf32>
    %250 = arith.mulf %249, %68 : vector<1x1xf32>
    %251 = arith.addf %248, %250 : vector<1x1xf32>
    %252 = vector.broadcast %114 : f32 to vector<1x1xf32>
    %253 = arith.mulf %252, %38 : vector<1x1xf32>
    %cst_32 = arith.constant 0.000000e+00 : f32
    %254 = vector.broadcast %cst_32 : f32 to vector<1x1xf32>
    %255 = arith.addf %254, %253 : vector<1x1xf32>
    %256 = vector.broadcast %115 : f32 to vector<1x1xf32>
    %257 = arith.mulf %256, %44 : vector<1x1xf32>
    %258 = arith.addf %255, %257 : vector<1x1xf32>
    %259 = vector.broadcast %116 : f32 to vector<1x1xf32>
    %260 = arith.mulf %259, %50 : vector<1x1xf32>
    %261 = arith.addf %258, %260 : vector<1x1xf32>
    %262 = vector.broadcast %114 : f32 to vector<1x1xf32>
    %263 = arith.mulf %262, %44 : vector<1x1xf32>
    %cst_33 = arith.constant 0.000000e+00 : f32
    %264 = vector.broadcast %cst_33 : f32 to vector<1x1xf32>
    %265 = arith.addf %264, %263 : vector<1x1xf32>
    %266 = vector.broadcast %115 : f32 to vector<1x1xf32>
    %267 = arith.mulf %266, %56 : vector<1x1xf32>
    %268 = arith.addf %265, %267 : vector<1x1xf32>
    %269 = vector.broadcast %116 : f32 to vector<1x1xf32>
    %270 = arith.mulf %269, %62 : vector<1x1xf32>
    %271 = arith.addf %268, %270 : vector<1x1xf32>
    %272 = vector.broadcast %114 : f32 to vector<1x1xf32>
    %273 = arith.mulf %272, %50 : vector<1x1xf32>
    %cst_34 = arith.constant 0.000000e+00 : f32
    %274 = vector.broadcast %cst_34 : f32 to vector<1x1xf32>
    %275 = arith.addf %274, %273 : vector<1x1xf32>
    %276 = vector.broadcast %115 : f32 to vector<1x1xf32>
    %277 = arith.mulf %276, %62 : vector<1x1xf32>
    %278 = arith.addf %275, %277 : vector<1x1xf32>
    %279 = vector.broadcast %116 : f32 to vector<1x1xf32>
    %280 = arith.mulf %279, %68 : vector<1x1xf32>
    %281 = arith.addf %278, %280 : vector<1x1xf32>
    %282 = vector.broadcast %96 : f32 to vector<1x1xf32>
    %283 = arith.mulf %201, %282 : vector<1x1xf32>
    %cst_35 = arith.constant 0.000000e+00 : f32
    %284 = vector.broadcast %cst_35 : f32 to vector<1x1xf32>
    %285 = arith.addf %284, %283 : vector<1x1xf32>
    %286 = vector.broadcast %97 : f32 to vector<1x1xf32>
    %287 = arith.mulf %211, %286 : vector<1x1xf32>
    %288 = arith.addf %285, %287 : vector<1x1xf32>
    %289 = vector.broadcast %98 : f32 to vector<1x1xf32>
    %290 = arith.mulf %221, %289 : vector<1x1xf32>
    %291 = arith.addf %288, %290 : vector<1x1xf32>
    %292 = vector.broadcast %105 : f32 to vector<1x1xf32>
    %293 = arith.mulf %141, %292 : vector<1x1xf32>
    %294 = arith.addf %291, %293 : vector<1x1xf32>
    %295 = vector.broadcast %117 : f32 to vector<1x1xf32>
    %296 = arith.mulf %295, %171 : vector<1x1xf32>
    %297 = arith.addf %294, %296 : vector<1x1xf32>
    %cst_36 = arith.constant 2.560000e+02 : f32
    %298 = arith.mulf %cst_36, %117 : f32
    %299 = arith.mulf %298, %105 : f32
    %300 = vector.broadcast %299 : f32 to vector<1x1xf32>
    %301 = arith.addf %297, %300 : vector<1x1xf32>
    %302 = vector.broadcast %99 : f32 to vector<1x1xf32>
    %303 = arith.mulf %201, %302 : vector<1x1xf32>
    %cst_37 = arith.constant 0.000000e+00 : f32
    %304 = vector.broadcast %cst_37 : f32 to vector<1x1xf32>
    %305 = arith.addf %304, %303 : vector<1x1xf32>
    %306 = vector.broadcast %100 : f32 to vector<1x1xf32>
    %307 = arith.mulf %211, %306 : vector<1x1xf32>
    %308 = arith.addf %305, %307 : vector<1x1xf32>
    %309 = vector.broadcast %101 : f32 to vector<1x1xf32>
    %310 = arith.mulf %221, %309 : vector<1x1xf32>
    %311 = arith.addf %308, %310 : vector<1x1xf32>
    %312 = vector.broadcast %106 : f32 to vector<1x1xf32>
    %313 = arith.mulf %141, %312 : vector<1x1xf32>
    %314 = arith.addf %311, %313 : vector<1x1xf32>
    %315 = vector.broadcast %117 : f32 to vector<1x1xf32>
    %316 = arith.mulf %315, %181 : vector<1x1xf32>
    %317 = arith.addf %314, %316 : vector<1x1xf32>
    %cst_38 = arith.constant 2.560000e+02 : f32
    %318 = arith.mulf %cst_38, %117 : f32
    %319 = arith.mulf %318, %106 : f32
    %320 = vector.broadcast %319 : f32 to vector<1x1xf32>
    %321 = arith.addf %317, %320 : vector<1x1xf32>
    %322 = vector.broadcast %102 : f32 to vector<1x1xf32>
    %323 = arith.mulf %201, %322 : vector<1x1xf32>
    %cst_39 = arith.constant 0.000000e+00 : f32
    %324 = vector.broadcast %cst_39 : f32 to vector<1x1xf32>
    %325 = arith.addf %324, %323 : vector<1x1xf32>
    %326 = vector.broadcast %103 : f32 to vector<1x1xf32>
    %327 = arith.mulf %211, %326 : vector<1x1xf32>
    %328 = arith.addf %325, %327 : vector<1x1xf32>
    %329 = vector.broadcast %104 : f32 to vector<1x1xf32>
    %330 = arith.mulf %221, %329 : vector<1x1xf32>
    %331 = arith.addf %328, %330 : vector<1x1xf32>
    %332 = vector.broadcast %107 : f32 to vector<1x1xf32>
    %333 = arith.mulf %141, %332 : vector<1x1xf32>
    %334 = arith.addf %331, %333 : vector<1x1xf32>
    %335 = vector.broadcast %117 : f32 to vector<1x1xf32>
    %336 = arith.mulf %335, %191 : vector<1x1xf32>
    %337 = arith.addf %334, %336 : vector<1x1xf32>
    %cst_40 = arith.constant 2.560000e+02 : f32
    %338 = arith.mulf %cst_40, %117 : f32
    %339 = arith.mulf %338, %107 : f32
    %340 = vector.broadcast %339 : f32 to vector<1x1xf32>
    %341 = arith.addf %337, %340 : vector<1x1xf32>
    %342 = vector.broadcast %96 : f32 to vector<1x1xf32>
    %343 = arith.mulf %231, %342 : vector<1x1xf32>
    %cst_41 = arith.constant 0.000000e+00 : f32
    %344 = vector.broadcast %cst_41 : f32 to vector<1x1xf32>
    %345 = arith.addf %344, %343 : vector<1x1xf32>
    %346 = vector.broadcast %97 : f32 to vector<1x1xf32>
    %347 = arith.mulf %241, %346 : vector<1x1xf32>
    %348 = arith.addf %345, %347 : vector<1x1xf32>
    %349 = vector.broadcast %98 : f32 to vector<1x1xf32>
    %350 = arith.mulf %251, %349 : vector<1x1xf32>
    %351 = arith.addf %348, %350 : vector<1x1xf32>
    %352 = vector.broadcast %105 : f32 to vector<1x1xf32>
    %353 = arith.mulf %151, %352 : vector<1x1xf32>
    %354 = arith.addf %351, %353 : vector<1x1xf32>
    %355 = vector.broadcast %118 : f32 to vector<1x1xf32>
    %356 = arith.mulf %355, %171 : vector<1x1xf32>
    %357 = arith.addf %354, %356 : vector<1x1xf32>
    %cst_42 = arith.constant 2.560000e+02 : f32
    %358 = arith.mulf %cst_42, %118 : f32
    %359 = arith.mulf %358, %105 : f32
    %360 = vector.broadcast %359 : f32 to vector<1x1xf32>
    %361 = arith.addf %357, %360 : vector<1x1xf32>
    %362 = vector.broadcast %99 : f32 to vector<1x1xf32>
    %363 = arith.mulf %231, %362 : vector<1x1xf32>
    %cst_43 = arith.constant 0.000000e+00 : f32
    %364 = vector.broadcast %cst_43 : f32 to vector<1x1xf32>
    %365 = arith.addf %364, %363 : vector<1x1xf32>
    %366 = vector.broadcast %100 : f32 to vector<1x1xf32>
    %367 = arith.mulf %241, %366 : vector<1x1xf32>
    %368 = arith.addf %365, %367 : vector<1x1xf32>
    %369 = vector.broadcast %101 : f32 to vector<1x1xf32>
    %370 = arith.mulf %251, %369 : vector<1x1xf32>
    %371 = arith.addf %368, %370 : vector<1x1xf32>
    %372 = vector.broadcast %106 : f32 to vector<1x1xf32>
    %373 = arith.mulf %151, %372 : vector<1x1xf32>
    %374 = arith.addf %371, %373 : vector<1x1xf32>
    %375 = vector.broadcast %118 : f32 to vector<1x1xf32>
    %376 = arith.mulf %375, %181 : vector<1x1xf32>
    %377 = arith.addf %374, %376 : vector<1x1xf32>
    %cst_44 = arith.constant 2.560000e+02 : f32
    %378 = arith.mulf %cst_44, %118 : f32
    %379 = arith.mulf %378, %106 : f32
    %380 = vector.broadcast %379 : f32 to vector<1x1xf32>
    %381 = arith.addf %377, %380 : vector<1x1xf32>
    %382 = vector.broadcast %102 : f32 to vector<1x1xf32>
    %383 = arith.mulf %231, %382 : vector<1x1xf32>
    %cst_45 = arith.constant 0.000000e+00 : f32
    %384 = vector.broadcast %cst_45 : f32 to vector<1x1xf32>
    %385 = arith.addf %384, %383 : vector<1x1xf32>
    %386 = vector.broadcast %103 : f32 to vector<1x1xf32>
    %387 = arith.mulf %241, %386 : vector<1x1xf32>
    %388 = arith.addf %385, %387 : vector<1x1xf32>
    %389 = vector.broadcast %104 : f32 to vector<1x1xf32>
    %390 = arith.mulf %251, %389 : vector<1x1xf32>
    %391 = arith.addf %388, %390 : vector<1x1xf32>
    %392 = vector.broadcast %107 : f32 to vector<1x1xf32>
    %393 = arith.mulf %151, %392 : vector<1x1xf32>
    %394 = arith.addf %391, %393 : vector<1x1xf32>
    %395 = vector.broadcast %118 : f32 to vector<1x1xf32>
    %396 = arith.mulf %395, %191 : vector<1x1xf32>
    %397 = arith.addf %394, %396 : vector<1x1xf32>
    %cst_46 = arith.constant 2.560000e+02 : f32
    %398 = arith.mulf %cst_46, %118 : f32
    %399 = arith.mulf %398, %107 : f32
    %400 = vector.broadcast %399 : f32 to vector<1x1xf32>
    %401 = arith.addf %397, %400 : vector<1x1xf32>
    %402 = vector.broadcast %96 : f32 to vector<1x1xf32>
    %403 = arith.mulf %261, %402 : vector<1x1xf32>
    %cst_47 = arith.constant 0.000000e+00 : f32
    %404 = vector.broadcast %cst_47 : f32 to vector<1x1xf32>
    %405 = arith.addf %404, %403 : vector<1x1xf32>
    %406 = vector.broadcast %97 : f32 to vector<1x1xf32>
    %407 = arith.mulf %271, %406 : vector<1x1xf32>
    %408 = arith.addf %405, %407 : vector<1x1xf32>
    %409 = vector.broadcast %98 : f32 to vector<1x1xf32>
    %410 = arith.mulf %281, %409 : vector<1x1xf32>
    %411 = arith.addf %408, %410 : vector<1x1xf32>
    %412 = vector.broadcast %105 : f32 to vector<1x1xf32>
    %413 = arith.mulf %161, %412 : vector<1x1xf32>
    %414 = arith.addf %411, %413 : vector<1x1xf32>
    %415 = vector.broadcast %119 : f32 to vector<1x1xf32>
    %416 = arith.mulf %415, %171 : vector<1x1xf32>
    %417 = arith.addf %414, %416 : vector<1x1xf32>
    %cst_48 = arith.constant 2.560000e+02 : f32
    %418 = arith.mulf %cst_48, %119 : f32
    %419 = arith.mulf %418, %105 : f32
    %420 = vector.broadcast %419 : f32 to vector<1x1xf32>
    %421 = arith.addf %417, %420 : vector<1x1xf32>
    %422 = vector.broadcast %99 : f32 to vector<1x1xf32>
    %423 = arith.mulf %261, %422 : vector<1x1xf32>
    %cst_49 = arith.constant 0.000000e+00 : f32
    %424 = vector.broadcast %cst_49 : f32 to vector<1x1xf32>
    %425 = arith.addf %424, %423 : vector<1x1xf32>
    %426 = vector.broadcast %100 : f32 to vector<1x1xf32>
    %427 = arith.mulf %271, %426 : vector<1x1xf32>
    %428 = arith.addf %425, %427 : vector<1x1xf32>
    %429 = vector.broadcast %101 : f32 to vector<1x1xf32>
    %430 = arith.mulf %281, %429 : vector<1x1xf32>
    %431 = arith.addf %428, %430 : vector<1x1xf32>
    %432 = vector.broadcast %106 : f32 to vector<1x1xf32>
    %433 = arith.mulf %161, %432 : vector<1x1xf32>
    %434 = arith.addf %431, %433 : vector<1x1xf32>
    %435 = vector.broadcast %119 : f32 to vector<1x1xf32>
    %436 = arith.mulf %435, %181 : vector<1x1xf32>
    %437 = arith.addf %434, %436 : vector<1x1xf32>
    %cst_50 = arith.constant 2.560000e+02 : f32
    %438 = arith.mulf %cst_50, %119 : f32
    %439 = arith.mulf %438, %106 : f32
    %440 = vector.broadcast %439 : f32 to vector<1x1xf32>
    %441 = arith.addf %437, %440 : vector<1x1xf32>
    %442 = vector.broadcast %102 : f32 to vector<1x1xf32>
    %443 = arith.mulf %261, %442 : vector<1x1xf32>
    %cst_51 = arith.constant 0.000000e+00 : f32
    %444 = vector.broadcast %cst_51 : f32 to vector<1x1xf32>
    %445 = arith.addf %444, %443 : vector<1x1xf32>
    %446 = vector.broadcast %103 : f32 to vector<1x1xf32>
    %447 = arith.mulf %271, %446 : vector<1x1xf32>
    %448 = arith.addf %445, %447 : vector<1x1xf32>
    %449 = vector.broadcast %104 : f32 to vector<1x1xf32>
    %450 = arith.mulf %281, %449 : vector<1x1xf32>
    %451 = arith.addf %448, %450 : vector<1x1xf32>
    %452 = vector.broadcast %107 : f32 to vector<1x1xf32>
    %453 = arith.mulf %161, %452 : vector<1x1xf32>
    %454 = arith.addf %451, %453 : vector<1x1xf32>
    %455 = vector.broadcast %119 : f32 to vector<1x1xf32>
    %456 = arith.mulf %455, %191 : vector<1x1xf32>
    %457 = arith.addf %454, %456 : vector<1x1xf32>
    %cst_52 = arith.constant 2.560000e+02 : f32
    %458 = arith.mulf %cst_52, %119 : f32
    %459 = arith.mulf %458, %107 : f32
    %460 = vector.broadcast %459 : f32 to vector<1x1xf32>
    %461 = arith.addf %457, %460 : vector<1x1xf32>
    %462 = vector.broadcast %120 : f32 to vector<1x1xf32>
    %463 = arith.mulf %462, %301 : vector<1x1xf32>
    %cst_53 = arith.constant 0.000000e+00 : f32
    %464 = vector.broadcast %cst_53 : f32 to vector<1x1xf32>
    %465 = arith.addf %464, %463 : vector<1x1xf32>
    %466 = vector.broadcast %121 : f32 to vector<1x1xf32>
    %467 = arith.mulf %466, %361 : vector<1x1xf32>
    %468 = arith.addf %465, %467 : vector<1x1xf32>
    %469 = vector.broadcast %122 : f32 to vector<1x1xf32>
    %470 = arith.mulf %469, %421 : vector<1x1xf32>
    %471 = arith.addf %468, %470 : vector<1x1xf32>
    %472 = vector.broadcast %120 : f32 to vector<1x1xf32>
    %473 = arith.mulf %472, %321 : vector<1x1xf32>
    %cst_54 = arith.constant 0.000000e+00 : f32
    %474 = vector.broadcast %cst_54 : f32 to vector<1x1xf32>
    %475 = arith.addf %474, %473 : vector<1x1xf32>
    %476 = vector.broadcast %121 : f32 to vector<1x1xf32>
    %477 = arith.mulf %476, %381 : vector<1x1xf32>
    %478 = arith.addf %475, %477 : vector<1x1xf32>
    %479 = vector.broadcast %122 : f32 to vector<1x1xf32>
    %480 = arith.mulf %479, %441 : vector<1x1xf32>
    %481 = arith.addf %478, %480 : vector<1x1xf32>
    %482 = vector.broadcast %120 : f32 to vector<1x1xf32>
    %483 = arith.mulf %482, %341 : vector<1x1xf32>
    %cst_55 = arith.constant 0.000000e+00 : f32
    %484 = vector.broadcast %cst_55 : f32 to vector<1x1xf32>
    %485 = arith.addf %484, %483 : vector<1x1xf32>
    %486 = vector.broadcast %121 : f32 to vector<1x1xf32>
    %487 = arith.mulf %486, %401 : vector<1x1xf32>
    %488 = arith.addf %485, %487 : vector<1x1xf32>
    %489 = vector.broadcast %122 : f32 to vector<1x1xf32>
    %490 = arith.mulf %489, %461 : vector<1x1xf32>
    %491 = arith.addf %488, %490 : vector<1x1xf32>
    %492 = vector.broadcast %123 : f32 to vector<1x1xf32>
    %493 = arith.mulf %492, %301 : vector<1x1xf32>
    %cst_56 = arith.constant 0.000000e+00 : f32
    %494 = vector.broadcast %cst_56 : f32 to vector<1x1xf32>
    %495 = arith.addf %494, %493 : vector<1x1xf32>
    %496 = vector.broadcast %124 : f32 to vector<1x1xf32>
    %497 = arith.mulf %496, %361 : vector<1x1xf32>
    %498 = arith.addf %495, %497 : vector<1x1xf32>
    %499 = vector.broadcast %125 : f32 to vector<1x1xf32>
    %500 = arith.mulf %499, %421 : vector<1x1xf32>
    %501 = arith.addf %498, %500 : vector<1x1xf32>
    %502 = vector.broadcast %123 : f32 to vector<1x1xf32>
    %503 = arith.mulf %502, %321 : vector<1x1xf32>
    %cst_57 = arith.constant 0.000000e+00 : f32
    %504 = vector.broadcast %cst_57 : f32 to vector<1x1xf32>
    %505 = arith.addf %504, %503 : vector<1x1xf32>
    %506 = vector.broadcast %124 : f32 to vector<1x1xf32>
    %507 = arith.mulf %506, %381 : vector<1x1xf32>
    %508 = arith.addf %505, %507 : vector<1x1xf32>
    %509 = vector.broadcast %125 : f32 to vector<1x1xf32>
    %510 = arith.mulf %509, %441 : vector<1x1xf32>
    %511 = arith.addf %508, %510 : vector<1x1xf32>
    %512 = vector.broadcast %123 : f32 to vector<1x1xf32>
    %513 = arith.mulf %512, %341 : vector<1x1xf32>
    %cst_58 = arith.constant 0.000000e+00 : f32
    %514 = vector.broadcast %cst_58 : f32 to vector<1x1xf32>
    %515 = arith.addf %514, %513 : vector<1x1xf32>
    %516 = vector.broadcast %124 : f32 to vector<1x1xf32>
    %517 = arith.mulf %516, %401 : vector<1x1xf32>
    %518 = arith.addf %515, %517 : vector<1x1xf32>
    %519 = vector.broadcast %125 : f32 to vector<1x1xf32>
    %520 = arith.mulf %519, %461 : vector<1x1xf32>
    %521 = arith.addf %518, %520 : vector<1x1xf32>
    %522 = vector.broadcast %126 : f32 to vector<1x1xf32>
    %523 = arith.mulf %522, %301 : vector<1x1xf32>
    %cst_59 = arith.constant 0.000000e+00 : f32
    %524 = vector.broadcast %cst_59 : f32 to vector<1x1xf32>
    %525 = arith.addf %524, %523 : vector<1x1xf32>
    %526 = vector.broadcast %127 : f32 to vector<1x1xf32>
    %527 = arith.mulf %526, %361 : vector<1x1xf32>
    %528 = arith.addf %525, %527 : vector<1x1xf32>
    %529 = vector.broadcast %128 : f32 to vector<1x1xf32>
    %530 = arith.mulf %529, %421 : vector<1x1xf32>
    %531 = arith.addf %528, %530 : vector<1x1xf32>
    %532 = vector.broadcast %126 : f32 to vector<1x1xf32>
    %533 = arith.mulf %532, %321 : vector<1x1xf32>
    %cst_60 = arith.constant 0.000000e+00 : f32
    %534 = vector.broadcast %cst_60 : f32 to vector<1x1xf32>
    %535 = arith.addf %534, %533 : vector<1x1xf32>
    %536 = vector.broadcast %127 : f32 to vector<1x1xf32>
    %537 = arith.mulf %536, %381 : vector<1x1xf32>
    %538 = arith.addf %535, %537 : vector<1x1xf32>
    %539 = vector.broadcast %128 : f32 to vector<1x1xf32>
    %540 = arith.mulf %539, %441 : vector<1x1xf32>
    %541 = arith.addf %538, %540 : vector<1x1xf32>
    %542 = vector.broadcast %126 : f32 to vector<1x1xf32>
    %543 = arith.mulf %542, %341 : vector<1x1xf32>
    %cst_61 = arith.constant 0.000000e+00 : f32
    %544 = vector.broadcast %cst_61 : f32 to vector<1x1xf32>
    %545 = arith.addf %544, %543 : vector<1x1xf32>
    %546 = vector.broadcast %127 : f32 to vector<1x1xf32>
    %547 = arith.mulf %546, %401 : vector<1x1xf32>
    %548 = arith.addf %545, %547 : vector<1x1xf32>
    %549 = vector.broadcast %128 : f32 to vector<1x1xf32>
    %550 = arith.mulf %549, %461 : vector<1x1xf32>
    %551 = arith.addf %548, %550 : vector<1x1xf32>
    %552 = vector.broadcast %84 : f32 to vector<1x1xf32>
    %553 = arith.mulf %471, %552 : vector<1x1xf32>
    %cst_62 = arith.constant 0.000000e+00 : f32
    %554 = vector.broadcast %cst_62 : f32 to vector<1x1xf32>
    %555 = arith.addf %554, %553 : vector<1x1xf32>
    %556 = vector.broadcast %87 : f32 to vector<1x1xf32>
    %557 = arith.mulf %481, %556 : vector<1x1xf32>
    %558 = arith.addf %555, %557 : vector<1x1xf32>
    %559 = vector.broadcast %90 : f32 to vector<1x1xf32>
    %560 = arith.mulf %491, %559 : vector<1x1xf32>
    %561 = arith.addf %558, %560 : vector<1x1xf32>
    %562 = vector.broadcast %85 : f32 to vector<1x1xf32>
    %563 = arith.mulf %471, %562 : vector<1x1xf32>
    %cst_63 = arith.constant 0.000000e+00 : f32
    %564 = vector.broadcast %cst_63 : f32 to vector<1x1xf32>
    %565 = arith.addf %564, %563 : vector<1x1xf32>
    %566 = vector.broadcast %88 : f32 to vector<1x1xf32>
    %567 = arith.mulf %481, %566 : vector<1x1xf32>
    %568 = arith.addf %565, %567 : vector<1x1xf32>
    %569 = vector.broadcast %91 : f32 to vector<1x1xf32>
    %570 = arith.mulf %491, %569 : vector<1x1xf32>
    %571 = arith.addf %568, %570 : vector<1x1xf32>
    %572 = vector.broadcast %86 : f32 to vector<1x1xf32>
    %573 = arith.mulf %471, %572 : vector<1x1xf32>
    %cst_64 = arith.constant 0.000000e+00 : f32
    %574 = vector.broadcast %cst_64 : f32 to vector<1x1xf32>
    %575 = arith.addf %574, %573 : vector<1x1xf32>
    %576 = vector.broadcast %89 : f32 to vector<1x1xf32>
    %577 = arith.mulf %481, %576 : vector<1x1xf32>
    %578 = arith.addf %575, %577 : vector<1x1xf32>
    %579 = vector.broadcast %92 : f32 to vector<1x1xf32>
    %580 = arith.mulf %491, %579 : vector<1x1xf32>
    %581 = arith.addf %578, %580 : vector<1x1xf32>
    %582 = vector.broadcast %84 : f32 to vector<1x1xf32>
    %583 = arith.mulf %501, %582 : vector<1x1xf32>
    %cst_65 = arith.constant 0.000000e+00 : f32
    %584 = vector.broadcast %cst_65 : f32 to vector<1x1xf32>
    %585 = arith.addf %584, %583 : vector<1x1xf32>
    %586 = vector.broadcast %87 : f32 to vector<1x1xf32>
    %587 = arith.mulf %511, %586 : vector<1x1xf32>
    %588 = arith.addf %585, %587 : vector<1x1xf32>
    %589 = vector.broadcast %90 : f32 to vector<1x1xf32>
    %590 = arith.mulf %521, %589 : vector<1x1xf32>
    %591 = arith.addf %588, %590 : vector<1x1xf32>
    %592 = vector.broadcast %85 : f32 to vector<1x1xf32>
    %593 = arith.mulf %501, %592 : vector<1x1xf32>
    %cst_66 = arith.constant 0.000000e+00 : f32
    %594 = vector.broadcast %cst_66 : f32 to vector<1x1xf32>
    %595 = arith.addf %594, %593 : vector<1x1xf32>
    %596 = vector.broadcast %88 : f32 to vector<1x1xf32>
    %597 = arith.mulf %511, %596 : vector<1x1xf32>
    %598 = arith.addf %595, %597 : vector<1x1xf32>
    %599 = vector.broadcast %91 : f32 to vector<1x1xf32>
    %600 = arith.mulf %521, %599 : vector<1x1xf32>
    %601 = arith.addf %598, %600 : vector<1x1xf32>
    %602 = vector.broadcast %86 : f32 to vector<1x1xf32>
    %603 = arith.mulf %501, %602 : vector<1x1xf32>
    %cst_67 = arith.constant 0.000000e+00 : f32
    %604 = vector.broadcast %cst_67 : f32 to vector<1x1xf32>
    %605 = arith.addf %604, %603 : vector<1x1xf32>
    %606 = vector.broadcast %89 : f32 to vector<1x1xf32>
    %607 = arith.mulf %511, %606 : vector<1x1xf32>
    %608 = arith.addf %605, %607 : vector<1x1xf32>
    %609 = vector.broadcast %92 : f32 to vector<1x1xf32>
    %610 = arith.mulf %521, %609 : vector<1x1xf32>
    %611 = arith.addf %608, %610 : vector<1x1xf32>
    %612 = vector.broadcast %84 : f32 to vector<1x1xf32>
    %613 = arith.mulf %531, %612 : vector<1x1xf32>
    %cst_68 = arith.constant 0.000000e+00 : f32
    %614 = vector.broadcast %cst_68 : f32 to vector<1x1xf32>
    %615 = arith.addf %614, %613 : vector<1x1xf32>
    %616 = vector.broadcast %87 : f32 to vector<1x1xf32>
    %617 = arith.mulf %541, %616 : vector<1x1xf32>
    %618 = arith.addf %615, %617 : vector<1x1xf32>
    %619 = vector.broadcast %90 : f32 to vector<1x1xf32>
    %620 = arith.mulf %551, %619 : vector<1x1xf32>
    %621 = arith.addf %618, %620 : vector<1x1xf32>
    %622 = vector.broadcast %85 : f32 to vector<1x1xf32>
    %623 = arith.mulf %531, %622 : vector<1x1xf32>
    %cst_69 = arith.constant 0.000000e+00 : f32
    %624 = vector.broadcast %cst_69 : f32 to vector<1x1xf32>
    %625 = arith.addf %624, %623 : vector<1x1xf32>
    %626 = vector.broadcast %88 : f32 to vector<1x1xf32>
    %627 = arith.mulf %541, %626 : vector<1x1xf32>
    %628 = arith.addf %625, %627 : vector<1x1xf32>
    %629 = vector.broadcast %91 : f32 to vector<1x1xf32>
    %630 = arith.mulf %551, %629 : vector<1x1xf32>
    %631 = arith.addf %628, %630 : vector<1x1xf32>
    %632 = vector.broadcast %86 : f32 to vector<1x1xf32>
    %633 = arith.mulf %531, %632 : vector<1x1xf32>
    %cst_70 = arith.constant 0.000000e+00 : f32
    %634 = vector.broadcast %cst_70 : f32 to vector<1x1xf32>
    %635 = arith.addf %634, %633 : vector<1x1xf32>
    %636 = vector.broadcast %89 : f32 to vector<1x1xf32>
    %637 = arith.mulf %541, %636 : vector<1x1xf32>
    %638 = arith.addf %635, %637 : vector<1x1xf32>
    %639 = vector.broadcast %92 : f32 to vector<1x1xf32>
    %640 = arith.mulf %551, %639 : vector<1x1xf32>
    %641 = arith.addf %638, %640 : vector<1x1xf32>
    %642 = vector.broadcast %93 : f32 to vector<1x1xf32>
    %643 = arith.mulf %471, %642 : vector<1x1xf32>
    %cst_71 = arith.constant 0.000000e+00 : f32
    %644 = vector.broadcast %cst_71 : f32 to vector<1x1xf32>
    %645 = arith.addf %644, %643 : vector<1x1xf32>
    %646 = vector.broadcast %94 : f32 to vector<1x1xf32>
    %647 = arith.mulf %481, %646 : vector<1x1xf32>
    %648 = arith.addf %645, %647 : vector<1x1xf32>
    %649 = vector.broadcast %95 : f32 to vector<1x1xf32>
    %650 = arith.mulf %491, %649 : vector<1x1xf32>
    %651 = arith.addf %648, %650 : vector<1x1xf32>
    %652 = vector.broadcast %129 : f32 to vector<1x1xf32>
    %653 = arith.addf %651, %652 : vector<1x1xf32>
    %654 = vector.broadcast %93 : f32 to vector<1x1xf32>
    %655 = arith.mulf %501, %654 : vector<1x1xf32>
    %cst_72 = arith.constant 0.000000e+00 : f32
    %656 = vector.broadcast %cst_72 : f32 to vector<1x1xf32>
    %657 = arith.addf %656, %655 : vector<1x1xf32>
    %658 = vector.broadcast %94 : f32 to vector<1x1xf32>
    %659 = arith.mulf %511, %658 : vector<1x1xf32>
    %660 = arith.addf %657, %659 : vector<1x1xf32>
    %661 = vector.broadcast %95 : f32 to vector<1x1xf32>
    %662 = arith.mulf %521, %661 : vector<1x1xf32>
    %663 = arith.addf %660, %662 : vector<1x1xf32>
    %664 = vector.broadcast %130 : f32 to vector<1x1xf32>
    %665 = arith.addf %663, %664 : vector<1x1xf32>
    %666 = vector.broadcast %93 : f32 to vector<1x1xf32>
    %667 = arith.mulf %531, %666 : vector<1x1xf32>
    %cst_73 = arith.constant 0.000000e+00 : f32
    %668 = vector.broadcast %cst_73 : f32 to vector<1x1xf32>
    %669 = arith.addf %668, %667 : vector<1x1xf32>
    %670 = vector.broadcast %94 : f32 to vector<1x1xf32>
    %671 = arith.mulf %541, %670 : vector<1x1xf32>
    %672 = arith.addf %669, %671 : vector<1x1xf32>
    %673 = vector.broadcast %95 : f32 to vector<1x1xf32>
    %674 = arith.mulf %551, %673 : vector<1x1xf32>
    %675 = arith.addf %672, %674 : vector<1x1xf32>
    %676 = vector.broadcast %131 : f32 to vector<1x1xf32>
    %677 = arith.addf %675, %676 : vector<1x1xf32>
    %678 = vector.broadcast %561 : vector<1x1xf32> to vector<16x128xf32>
    %679 = arith.mulf %30, %678 : vector<16x128xf32>
    %680 = vector.broadcast %571 : vector<1x1xf32> to vector<16x128xf32>
    %681 = arith.mulf %31, %680 : vector<16x128xf32>
    %682 = arith.addf %679, %681 : vector<16x128xf32>
    %683 = vector.broadcast %581 : vector<1x1xf32> to vector<16x128xf32>
    %684 = arith.mulf %32, %683 : vector<16x128xf32>
    %685 = arith.addf %682, %684 : vector<16x128xf32>
    %686 = vector.broadcast %653 : vector<1x1xf32> to vector<16x128xf32>
    %687 = arith.addf %685, %686 : vector<16x128xf32>
    %688 = arith.addf %687, %1 : vector<16x128xf32>
    %c0_74 = arith.constant 0 : index
    %c0_75 = arith.constant 0 : index
    %c0_76 = arith.constant 0 : index
    %c0_77 = arith.constant 0 : index
    %689 = vector.load %arg3[%c0_74, %c0_75, %c0_76, %c0_77] : memref<1x3x16x128xf32, #tpu.memory_space<vmem>>, vector<1x1x16x128xf32>
    %690 = vector.shape_cast %689 : vector<1x1x16x128xf32> to vector<16x128xf32>
    %691 = vector.shape_cast %688 : vector<16x128xf32> to vector<1x1x16x128xf32>
    tpu.vector_store %arg3[%c0_74, %c0_75, %c0_76, %c0_77], %691 {strides = array<i32>} : memref<1x3x16x128xf32, #tpu.memory_space<vmem>>, vector<1x1x16x128xf32>,
    %692 = vector.broadcast %591 : vector<1x1xf32> to vector<16x128xf32>
    %693 = arith.mulf %30, %692 : vector<16x128xf32>
    %694 = vector.broadcast %601 : vector<1x1xf32> to vector<16x128xf32>
    %695 = arith.mulf %31, %694 : vector<16x128xf32>
    %696 = arith.addf %693, %695 : vector<16x128xf32>
    %697 = vector.broadcast %611 : vector<1x1xf32> to vector<16x128xf32>
    %698 = arith.mulf %32, %697 : vector<16x128xf32>
    %699 = arith.addf %696, %698 : vector<16x128xf32>
    %700 = vector.broadcast %665 : vector<1x1xf32> to vector<16x128xf32>
    %701 = arith.addf %699, %700 : vector<16x128xf32>
    %702 = arith.addf %701, %3 : vector<16x128xf32>
    %c0_78 = arith.constant 0 : index
    %c1_79 = arith.constant 1 : index
    %c0_80 = arith.constant 0 : index
    %c0_81 = arith.constant 0 : index
    %703 = vector.load %arg3[%c0_78, %c1_79, %c0_80, %c0_81] : memref<1x3x16x128xf32, #tpu.memory_space<vmem>>, vector<1x1x16x128xf32>
    %704 = vector.shape_cast %703 : vector<1x1x16x128xf32> to vector<16x128xf32>
    %705 = vector.shape_cast %702 : vector<16x128xf32> to vector<1x1x16x128xf32>
    tpu.vector_store %arg3[%c0_78, %c1_79, %c0_80, %c0_81], %705 {strides = array<i32>} : memref<1x3x16x128xf32, #tpu.memory_space<vmem>>, vector<1x1x16x128xf32>,
    %706 = vector.broadcast %621 : vector<1x1xf32> to vector<16x128xf32>
    %707 = arith.mulf %30, %706 : vector<16x128xf32>
    %708 = vector.broadcast %631 : vector<1x1xf32> to vector<16x128xf32>
    %709 = arith.mulf %31, %708 : vector<16x128xf32>
    %710 = arith.addf %707, %709 : vector<16x128xf32>
    %711 = vector.broadcast %641 : vector<1x1xf32> to vector<16x128xf32>
    %712 = arith.mulf %32, %711 : vector<16x128xf32>
    %713 = arith.addf %710, %712 : vector<16x128xf32>
    %714 = vector.broadcast %677 : vector<1x1xf32> to vector<16x128xf32>
    %715 = arith.addf %713, %714 : vector<16x128xf32>
    %716 = arith.addf %715, %5 : vector<16x128xf32>
    %c0_82 = arith.constant 0 : index
    %c2_83 = arith.constant 2 : index
    %c0_84 = arith.constant 0 : index
    %c0_85 = arith.constant 0 : index
    %717 = vector.load %arg3[%c0_82, %c2_83, %c0_84, %c0_85] : memref<1x3x16x128xf32, #tpu.memory_space<vmem>>, vector<1x1x16x128xf32>
    %718 = vector.shape_cast %717 : vector<1x1x16x128xf32> to vector<16x128xf32>
    %719 = vector.shape_cast %716 : vector<16x128xf32> to vector<1x1x16x128xf32>
    tpu.vector_store %arg3[%c0_82, %c2_83, %c0_84, %c0_85], %719 {strides = array<i32>} : memref<1x3x16x128xf32, #tpu.memory_space<vmem>>, vector<1x1x16x128xf32>,
    return
  }
  func.func @transform_0(%arg0: i32) -> i32 {
    %c0_i32 = arith.constant 0 : i32
    %c0_i32_0 = arith.constant 0 : i32
    return %c0_i32 : i32
  }
  func.func @transform_1(%arg0: i32) -> (i32, i32, i32, i32) {
    %c0_i32 = arith.constant 0 : i32
    %c0_i32_0 = arith.constant 0 : i32
    %c0_i32_1 = arith.constant 0 : i32
    %c0_i32_2 = arith.constant 0 : i32
    return %arg0, %c0_i32, %c0_i32_0, %c0_i32_1 : i32, i32, i32, i32
  }
  func.func @transform_2(%arg0: i32) -> (i32, i32, i32, i32) {
    %c0_i32 = arith.constant 0 : i32
    %c0_i32_0 = arith.constant 0 : i32
    %c0_i32_1 = arith.constant 0 : i32
    %c0_i32_2 = arith.constant 0 : i32
    return %arg0, %c0_i32, %c0_i32_0, %c0_i32_1 : i32, i32, i32, i32
  }
}

</mosaic_0001>

<bundles_post_ra>
// kernel: tpu_custom_call.1
= control target key start
LH: loop header
LB: loop body
LE: loop exit
PB: predicated region body
PF: predicated region fallthrough
CT: control target
= control target key end

     0   :  { %s2012_s0 = inlined_call_operand.vmem [shape: f32[48], index: 0, kind: input, shape index: {}]   ;;  %s2013_s1 = inlined_call_operand.hbm [shape: f32[2,3,16,128], index: 1, kind: input, shape index: {}, may-alias: {1,2}]   ;;  %s2014_s2 = inlined_call_operand.hbm [shape: f32[2,3,16,128], index: 2, kind: output, shape index: {}, may-alias: {1,2}]  }
   0x1   :  { %2065 = sst [smem:[#allocation61_spill]] %s2012_s0 }
   0x2   :  { %2066 = sst [smem:[#allocation62_spill]] %s2013_s1 }
   0x3   :  { %2067 = sst [smem:[#allocation63_spill]] %s2014_s2 }
   0x4   :  { %7 = vsyncpa [#allocation5], 0 }
   0x5   :  { %8 = vsyncpa [#allocation3], 0 }
   0x6   :  { %10 = vsyncpa [#allocation3 + $0x1], 0 }
   0x7   :  { %11 = vsyncpa [#allocation4], 0 }
   0x8   :  { %13 = vsyncpa [#allocation4 + $0x1], 0  ;;  %s1247_s9 = smov 0   ;;  %s1249_s10 = smov 0  }
   0x9   :  { %s1251_s11 = smov 0   ;;  %s1253_s12 = smov 0  }
   0xa LB: > { %2068 = sst [smem:[#allocation11_spill]] %s1210_s9  ;;  %s1268_s13 = sadd.s32 4294967295, %s1222_s12   ;;  %s1222_s12 = sphi %s1253_s12, %s2183_s12   ;;  %s1218_s11 = sphi %s1251_s11, %s2186_s11   ;;  %s1214_s10 = sphi %s1249_s10, %s2185_s10   ;;  %s1210_s9 = sphi %s1247_s9, %s2184_s9  }
   0xb   : > { %2069 = sst [smem:[#allocation12_spill]] %s1214_s10  ;;  %s934_s14 = sadd.s32 4294967294, %s1222_s12  }
   0xc   : > { %2070 = sst [smem:[#allocation13_spill]] %s1218_s11  ;;  %s1272_s15 = sadd.s32 1, %s1222_s12  }
   0xd   : > { %2071 = sst [smem:[#allocation14_spill]] %s1222_s12  ;;  %s47_s16 = sadd.s32 1, %s1218_s11 }
   0xe   : > { %2072 = sst [smem:[#allocation15_spill]] %s1268_s13  ;;  %s44_s17 = ssub.s32 %s1222_s12, %s1272_s15 }
   0xf   : > { %2073 = sst [smem:[#allocation16_spill]] %s1272_s15  ;;  %p54_p0 = scmp.ne.s32.totalorder %s1218_s11, %s1214_s10 }
  0x10   : > { %p45_p1 = scmp.eq.s32.totalorder %s44_s17, 0  ;;  %p55_p2 = scmp.eq.s32.totalorder %s1222_s12, 0 }
  0x11   : > { %p60_p3 = scmp.ne.s32.totalorder %s1214_s10, %s1210_s9  ;;  %p2016_p4 = scmp.eq.s32.totalorder %s1268_s13, 0 }
  0x12   : > { %s1284_s18 = scalar_select %p45_p1, %s1218_s11, %s47_s16  }
  0x13   : > { %p1286_p5 = por %p55_p2, %p54_p0  ;;  %p1292_p6 = por %p2016_p4, %p60_p3 }
  0x14   : > { %2074 = sst [smem:[#allocation17_spill]] %s1284_s18  ;;  %p84_p7 = scmp.eq.s32.totalorder %s1268_s13, 1 }
  0x15   : > { %s2076_s20 = scalar_select %p1292_p6, 1, 0 }
  0x16   : > { %p90_p8 = scmp.eq.s32.totalorder %s934_s14, 1  ;;  %p935_p9 = scmp.ge.s32.totalorder %s1222_s12, 1 }
  0x17   : > { %p97_p10 = scmp.lt.s32.totalorder %s1222_s12, 3  ;;  %p1299_p11 = por %p84_p7, %p54_p0 }
  0x18   : > { %p1303_p12 = por %p90_p8, %p60_p3  ;;  %s2082_s0 = sld [smem:[#allocation61_spill]] }
  0x19   : > { %s2077_s21 = scalar_select %p1299_p11, 1, 0 }
  0x1a   : > { %s2079_s22 = scalar_select %p1303_p12, 1, 0 }
  0x1b   : > { %2078 = sst [smem:[#allocation18_spill]] %s2077_s21  ;;  %p1307_p13 = pnand %p935_p9, %p97_p10 }
  0x1c   : > { %2080 = sst [smem:[#allocation19_spill]] %s2079_s22  ;;  %p1044_p2 = scmp.lt.s32.totalorder %s1222_s12, 2 }
  0x1d   : > { %p1031_p1 = pneg %p1307_p13  ;;  %s121_s28 = sand.u32 1, %s1218_s11  }
  0x1e   : > { %s110_s26 = sshll.u32 %s2082_s0, 4  ;;  %p1327_p3 = pnand %p1044_p2, %p1286_p5  ;;  %s111_s26 = int_to_ptr.vmem [resolvable:$true] %s110_s26 }
  0x1f   : > { %p1320_p7 = pnand %p1031_p1, %p2016_p4  ;;  %s1001_s30 = smul.u32 48, %s121_s28 }
  0x20   : > { %s1107_s3 = scalar_lea.vmem %s111_s26, 16  ;;  %p1115_p12 = scmp.lt.s32.totalorder %s111_s26, %s111_s26 }
  0x21   : > { %p1108_p8 = scmp.ne.s32.totalorder %s111_s26, %s1107_s3  ;;  %p1109_p9 = pneg %p1320_p7 }
  0x22   : > { %p1116_p11 = scmp.lt.s32.totalorder %s1107_s3, %s1107_s3 }
  0x23   : > { %p1110_p10 = pnand %p1109_p9, %p1108_p8 }
  0x24   : > { %p1117_p1 = por %p1116_p11, %p1115_p12 }
  0x25   : > { %p1111_p0 = pneg %p1110_p10 }
  0x27   : > { %p1118_p4 = pnand %p1117_p1, %p1111_p0 }
  0x29   : > { %1121 = shalt.err (!%p1118_p4)
}
  0x2a   : > { %s1224_s4 = smov [#allocation2]   ;;  %s1002_s5 = smul.u32 768, %s1222_s12 }
  0x2b   : > { %1034 = dma.vmem_to_smem (!%p1320_p7), %s111_s26, 16, %s1224_s4, [#allocation5]  }
  0x2c   : > { %s125_s6 = scalar_lea.vmem [#allocation6], %s1001_s30  ;;  %s2085_s1 = sld [smem:[#allocation62_spill]] }
  0x2d   : > { %s132_s7 = sshll.u32 %s125_s6, 4  ;;  %s1343_s17 = scalar_lea.sflag [#allocation3], %s121_s28  ;;  %s1336_s7 = int_to_ptr.vmem [resolvable:$true] %s132_s7 }
  0x2e   : > { %p1124_p5 = pneg %p1327_p3 }
  0x32   : > { %s1341_s16 = scalar_lea.hbm %s2085_s1, %s1002_s5  ;;  %s1127_s26 = scalar_lea.hbm %s2085_s1, 1536 }
  0x33   : > { %s1122_s19 = scalar_lea.hbm %s1341_s16, 768  ;;  %p1128_p0 = scmp.lt.u32.totalorder %s1341_s16, %s2085_s1 }
  0x34   : > { %p1123_p4 = scmp.ne.s32.totalorder %s1341_s16, %s1122_s19  ;;  %p1129_p2 = scmp.lt.u32.totalorder %s1127_s26, %s1122_s19 }
  0x35   : > { %p1131_p8 = scmp.lt.u32.totalorder %s1122_s19, %s1341_s16 }
  0x36   : > { %p1125_p11 = pnand %p1124_p5, %p1123_p4  ;;  %p1130_p7 = por %p1129_p2, %p1128_p0 }
  0x38   : > { %p1126_p12 = pneg %p1125_p11  ;;  %p1132_p9 = por %p1131_p8, %p1130_p7 }
  0x3a   : > { %p1133_p10 = pnand %p1132_p9, %p1126_p12 }
  0x3c   : > { %1136 = shalt.err (!%p1133_p10)
}
  0x3d   : > { %s1137_s28 = scalar_lea.vmem %s1336_s7, 768  ;;  %s1225_s3 = smov [#allocation6]  }
  0x3e   : > { %p1138_p1 = scmp.ne.s32.totalorder %s1336_s7, %s1137_s28  ;;  %s1142_s4 = sshll.u32 %s1225_s3, 4  ;;  %s1143_s4 = int_to_ptr.vmem [resolvable:$false] %s1142_s4 }
  0x3f   : > { %s1144_s5 = scalar_lea.vmem %s1143_s4, 1536  ;;  %p1145_p6 = scmp.lt.s32.totalorder %s1336_s7, %s1143_s4 }
  0x40   : > { %p1140_p4 = pnand %p1138_p1, %p1124_p5  ;;  %p1146_p0 = scmp.lt.s32.totalorder %s1144_s5, %s1137_s28 }
  0x42   : > { %p1141_p11 = pneg %p1140_p4  ;;  %p1147_p2 = por %p1146_p0, %p1145_p6 }
  0x44   : > { %p1148_p7 = pnand %p1147_p2, %p1141_p11 }
  0x46   : > { %1151 = shalt.err (!%p1148_p7)
}
  0x47   : > { %s1226_s6 = smov 128   ;;  %s1227_s8 = smov 8  }
  0x48   : > { %1038 = dma.hbm_to_vmem [thread:$0]  (!%p1327_p3), %s1341_s16, 768, %s1336_s7, %s1343_s17, %s1226_s6, %s1226_s6, %s1227_s8  }
  0x49   : > { %144 = sbr.rel (%p1307_p13) target bundleno = 449 (0x1c1), region = 28 }
  0x50   : > { %p2086_p5 = scmp.eq.s32.totalorder %s1268_s13, 0 }
  0x52   : > { %1197 = dma.done.wait (%p2086_p5), [#allocation5], 16   ;;  %p2087_p12 = pmov %p2086_p5 }
  0x53   : > { %s1378_s14 = sand.u32 1, %s1214_s10   ;;  %p2090_p6 = scmp.ne.s32.totalorder %s2076_s20, 0 }
  0x54   : > { %1199 = vsyncadd (%p2087_p12), [#allocation5], 4294967280  ;;  %2088 = sst [smem:[#allocation20_spill]] %s1378_s14  ;;  %s2018_s19 = smul.u32 48, %s1378_s14 }
  0x55   : > { %s151_s24 = scalar_lea.sflag [#allocation3], %s1378_s14 }
  0x56   : > { %s1384_s29 = scalar_lea.vmem [#allocation6], %s2018_s19 }
  0x57   : > { %2089 = sst [smem:[#allocation21_spill]] %s1384_s29 }
  0x58   : > { %1201 = dma.done.wait (%p2090_p6), %s151_s24, 768  }
  0x59   : > { %1203 = vsyncadd (%p2090_p6), %s151_s24, 4294966528 }
  0x5a   : > { %159 = sfence }
  0x5b   : > { %v176_v0 = vld [vmem:[%s1384_s29] sm:$0xff]  ;;  %v177_v1 = vld [vmem:[%s1384_s29 + $0x8] sm:$0xff]  ;;  %v941_v2 = vld [vmem:[%s1384_s29 + $0x10] sm:$0xff]  ;;  %v218_v22 = vlaneseq  ;;  %v1228_v41 = vmov 0.0   ;;  %s1438_s20 = sld [smem:[#allocation2 + $0x18]]  ;;  %s1440_s23 = sld [smem:[#allocation2 + $0x1b]] }
  0x5c   : > { %v942_v3 = vld [vmem:[%s1384_s29 + $0x18] sm:$0xff]  ;;  %v943_v4 = vld [vmem:[%s1384_s29 + $0x20] sm:$0xff]  ;;  %v944_v5 = vld [vmem:[%s1384_s29 + $0x28] sm:$0xff]  ;;  %s1442_s7 = sld [smem:[#allocation2 + $0x1e]]  ;;  %s1444_s16 = sld [smem:[#allocation2 + $0x19]] }
  0x5d   : > { %v184_v6 = vmax.f32 %v941_v2, %v943_v4  ;;  %v185_v7 = vmax.f32 %v942_v3, %v944_v5  ;;  %v219_v23 = vshrl.u32 %v218_v22, 7  ;;  %v222_v35 = vand.u32 127, %v218_v22  ;;  %s1446_s17 = sld [smem:[#allocation2 + $0x1c]]  ;;  %s1448_s25 = sld [smem:[#allocation2 + $0x1f]] }
  0x5e   : > { %s1450_s26 = sld [smem:[#allocation2 + $0x1a]]  ;;  %s1452_s27 = sld [smem:[#allocation2 + $0x1d]] }
  0x5f   : > { %v186_v8 = vmax.f32 %v176_v0, %v184_v6  ;;  %v187_v9 = vmax.f32 %v177_v1, %v185_v7  ;;  %v220_v29 = vadd.s32 8, %v219_v23  ;;  %v223_v36 = vmul.u32 128, %v219_v23  ;;  %s1454_s30 = sld [smem:[#allocation2 + $0x20]]  ;;  %s1456_s28 = sld [smem:[#allocation2 + $0xc]] }
  0x60   : > { %s1458_s3 = sld [smem:[#allocation2 + $0xf]]  ;;  %s1460_s4 = sld [smem:[#allocation2 + $0xd]] }
  0x61   : > { %v188_v10 = vsub.f32 %v176_v0, %v186_v8  ;;  %v189_v11 = vsub.f32 %v177_v1, %v187_v9  ;;  %v194_v12 = vsub.f32 %v941_v2, %v186_v8  ;;  %v195_v13 = vsub.f32 %v942_v3, %v187_v9  ;;  %s1462_s5 = sld [smem:[#allocation2 + $0x12]]  ;;  %s1464_s6 = sld [smem:[#allocation2 + $0x10]] }
  0x62   : > { %v200_v14 = vsub.f32 %v943_v4, %v186_v8  ;;  %v201_v15 = vsub.f32 %v944_v5, %v187_v9  ;;  %v224_v37 = vmul.u32 128, %v220_v29  ;;  %v225_v38 = vadd.s32 %v223_v36, %v222_v35  ;;  %s1466_s8 = sld [smem:[#allocation2 + $0x13]]  ;;  %s1468_s24 = sld [smem:[#allocation2 + $0xe]] }
  0x63   : > { %v190_v16 = vmul.f32 1.442695, %v188_v10  ;;  %v192_v17 = vmul.f32 1.442695, %v189_v11  ;;  %v196_v18 = vmul.f32 1.442695, %v194_v12 }
  0x64   : > { %v198_v19 = vmul.f32 1.442695, %v195_v13  ;;  %v202_v20 = vmul.f32 1.442695, %v200_v14  ;;  %v204_v21 = vmul.f32 1.442695, %v201_v15  ;;  %v226_v39 = vadd.s32 %v224_v37, %v222_v35 }
  0x65   : > { %1085 = vpow2.f32 %v190_v16  ;;  %vm227_vm0 = vcmp.lt.s32.totalorder %v225_v38, 256  ;;  %s1470_s19 = sld [smem:[#allocation2 + $0x11]]  ;;  %s1472_s0 = sld [smem:[#allocation2 + $0x14]] }
  0x66   : > { %1087 = vpow2.f32 %v192_v17  ;;  %vm228_vm1 = vcmp.lt.s32.totalorder %v226_v39, 256  ;;  %v945_v42 = vsel %vm227_vm0, 1.0, %v1228_v41  ;;  %s1474_s1 = sld [smem:[#allocation2 + $0x21]]  ;;  %s1476_s18 = sld [smem:[#allocation2 + $0x15]] }
  0x67   : > { %1089 = vpow2.f32 %v196_v18  ;;  %v946_v45 = vsel %vm228_vm1, 1.0, %v1228_v41  ;;  %s1478_s11 = sld [smem:[#allocation2 + $0x16]]  ;;  %s1480_s10 = sld [smem:[#allocation2 + $0x17]] }
  0x68   : > { %1091 = vpow2.f32 %v198_v19  ;;  %s1482_s15 = sld [smem:[#allocation2 + $0x22]]  ;;  %s1484_s12 = sld [smem:[#allocation2]] }
  0x69   : > { %1093 = vpow2.f32 %v202_v20  ;;  %s1486_s22 = sld [smem:[#allocation2 + $0x23]]  ;;  %s1488_s9 = sld [smem:[#allocation2 + $0x1]] }
  0x6a   : > { %1095 = vpow2.f32 %v204_v21  ;;  %s1490_s2 = sld [smem:[#allocation2 + $0x2]]  ;;  %s1492_s21 = sld [smem:[#allocation2 + $0x3]] }
  0x6b   : > { %2097 = sst [smem:[#allocation28_spill]] %s1472_s0  ;;  %s1494_s14 = sld [smem:[#allocation2 + $0x4]] }
  0x6c   : > { %2098 = sst [smem:[#allocation29_spill]] %s1474_s1  ;;  %s1496_s29 = sld [smem:[#allocation2 + $0x5]] }
  0x6d   : > { %s1499_s13 = smul.f32 256.0, %s1474_s1  ;;  %s1514_s1 = sld [smem:[#allocation2 + $0x27]] }
  0x6e   : > { %2099 = sst [smem:[#allocation30_spill]] %s1484_s12  ;;  %s1501_s12 = sld [smem:[#allocation2 + $0x6]] }
  0x6f   : > { %v1086_v24 = vpop.eup %1085  ;;  %2100 = sst [smem:[#allocation31_spill]] %s1488_s9  ;;  %s1503_s9 = sld [smem:[#allocation2 + $0x7]] }
  0x70   : > { %v1088_v25 = vpop.eup %1087  ;;  %2101 = sst [smem:[#allocation32_spill]] %s1490_s2  ;;  %s1505_s2 = sld [smem:[#allocation2 + $0x24]] }
  0x71   : > { %v1090_v26 = vpop.eup %1089  ;;  %2102 = sst [smem:[#allocation33_spill]] %s1492_s21  ;;  %s1507_s21 = sld [smem:[#allocation2 + $0x25]] }
  0x72   : > { %v1092_v27 = vpop.eup %1091  ;;  %v206_v28 = vadd.f32 %v1090_v26, %v1086_v24  ;;  %2103 = sst [smem:[#allocation34_spill]] %s1494_s14  ;;  %s1509_s14 = sld [smem:[#allocation2 + $0x26]] }
  0x73   : > { %v1094_v30 = vpop.eup %1093  ;;  %v207_v31 = vadd.f32 %v1092_v27, %v1088_v25  ;;  %2104 = sst [smem:[#allocation35_spill]] %s1496_s29  ;;  %s1512_s29 = smul.f32 256.0, %s1482_s15 }
  0x74   : > { %v1096_v32 = vpop.eup %1095  ;;  %v208_v33 = vadd.f32 %v1094_v30, %v206_v28  ;;  %2105 = sst [smem:[#allocation36_spill]] %s1501_s12  ;;  %s1518_s0 = sld [smem:[#allocation2 + $0x28]] }
  0x75   : > { %v209_v34 = vadd.f32 %v1096_v32, %v207_v31  ;;  %2106 = sst [smem:[#allocation37_spill]] %s1503_s9  ;;  %s533_s9 = smul.f32 %s1478_s11, %s1499_s13 }
  0x76   : > { %1097 = vrcp.f32 %v208_v33  ;;  %2107 = sst [smem:[#allocation38_spill]] %s1505_s2  ;;  %s1522_s2 = sld [smem:[#allocation2 + $0x29]] }
  0x77   : > { %1099 = vrcp.f32 %v209_v34  ;;  %2108 = sst [smem:[#allocation39_spill]] %s1507_s21  ;;  %s1535_s12 = smul.f32 256.0, %s1486_s22 }
  0x78   : > { %2109 = sst [smem:[#allocation40_spill]] %s1514_s1  ;;  %s1532_s1 = sld [smem:[#allocation2 + $0x2a]] }
  0x79   : > { %s2110_s21 = sld [smem:[#allocation28_spill]] }
  0x80   : > { %v1098_v40 = vpop.eup %1097 }
  0x81   : > { %v1100_v43 = vpop.eup %1099  ;;  %v211_v44 = vmul.f32 %v1098_v40, %v1086_v24  ;;  %v216_v46 = vmul.f32 %v1098_v40, %v1094_v30  ;;  %v214_v47 = vmul.f32 %v1098_v40, %v1090_v26 }
  0x82   : > { %v213_v48 = vmul.f32 %v1100_v43, %v1088_v25  ;;  %v217_v49 = vmul.f32 %v1100_v43, %v1096_v32  ;;  %v215_v50 = vmul.f32 %v1100_v43, %v1092_v27 }
  0x83   : > { %v1396_v51 = vmul.f32 %v945_v42, %v211_v44  ;;  %v1398_v52 = vmul.f32 %v945_v42, %v216_v46  ;;  %v1400_v53 = vmul.f32 %v945_v42, %v214_v47 }
  0x84   : > { %v1402_v54 = vmul.f32 %v946_v45, %v213_v48  ;;  %v1404_v55 = vmul.f32 %v946_v45, %v217_v49  ;;  %v1406_v56 = vmul.f32 %v946_v45, %v215_v50 }
  0x85   : > { %2091 = vst [vmem:[#allocation22_spill] sm:$0xff] %v1396_v51  ;;  %2092 = vst [vmem:[#allocation23_spill] sm:$0xff] %v1398_v52  ;;  %v265_v57 = vmul.f32 %v1398_v52, %v1396_v51  ;;  %v239_v58 = vmul.f32 %v1396_v51, %v1396_v51  ;;  %v278_v59 = vmul.f32 %v1400_v53, %v1400_v53 }
  0x86   : > { %2093 = vst [vmem:[#allocation24_spill] sm:$0xff] %v1400_v53  ;;  %2094 = vst [vmem:[#allocation25_spill] sm:$0xff] %v1402_v54  ;;  %v317_v60 = vadd.f32 %v1402_v54, %v1396_v51  ;;  %v266_v61 = vmul.f32 %v1404_v55, %v1402_v54  ;;  %v240_v62 = vmul.f32 %v1402_v54, %v1402_v54 }
  0x87   : > { %2095 = vst [vmem:[#allocation26_spill] sm:$0xff] %v1404_v55  ;;  %2096 = vst [vmem:[#allocation27_spill] sm:$0xff] %v1406_v56  ;;  %v279_v63 = vmul.f32 %v1406_v56, %v1406_v56  ;;  %v252_v2 = vmul.f32 %v1400_v53, %v1396_v51  ;;  %v253_v3 = vmul.f32 %v1406_v56, %v1402_v54 }
  0x88   : > { %318 = vadd.xlane.f32.xlu0 %v317_v60  ;;  %v267_v0 = vadd.f32 %v266_v61, %v265_v57  ;;  %v241_v1 = vadd.f32 %v240_v62, %v239_v58  ;;  %v304_v5 = vmul.f32 %v1398_v52, %v1398_v52  ;;  %v305_v6 = vmul.f32 %v1404_v55, %v1404_v55 }
  0x89   : > { %v280_v4 = vadd.f32 %v279_v63, %v278_v59  ;;  %v254_v7 = vadd.f32 %v253_v3, %v252_v2  ;;  %v291_v8 = vmul.f32 %v1398_v52, %v1400_v53  ;;  %v292_v9 = vmul.f32 %v1404_v55, %v1406_v56 }
  0x8a   : > { %268 = vadd.xlane.f32.xlu1 %v267_v0  ;;  %v306_v10 = vadd.f32 %v305_v6, %v304_v5  ;;  %v328_v12 = vadd.f32 %v1406_v56, %v1400_v53  ;;  %v339_v13 = vadd.f32 %v1404_v55, %v1398_v52 }
  0x8b   : > { %v293_v11 = vadd.f32 %v292_v9, %v291_v8 }
  0x8c   : > { %242 = vadd.xlane.f32.xlu0 %v241_v1 }
  0x8e   : > { %281 = vadd.xlane.f32.xlu1 %v280_v4 }
  0x90   : > { %255 = vadd.xlane.f32.xlu0 %v254_v7 }
  0x92   : > { %307 = vadd.xlane.f32.xlu1 %v306_v10 }
  0x94   : > { %294 = vadd.xlane.f32.xlu0 %v293_v11 }
  0x96   : > { %329 = vadd.xlane.f32.xlu1 %v328_v12 }
  0x98   : > { %340 = vadd.xlane.f32.xlu0 %v339_v13 }
 0x115   : > { %v319_v14 = vpop.xlane.xlu0 %318 }
 0x116   : > { %v320_v17 = vrot.slane %v319_v14, 4 }
 0x117   : > { %v269_v15 = vpop.xlane.xlu1 %268 }
 0x118   : > { %v270_v16 = vrot.slane %v269_v15, 4  ;;  %v321_v24 = vadd.f32 %v320_v17, %v319_v14 }
 0x119   : > { %v243_v18 = vpop.xlane.xlu0 %242 }
 0x11a   : > { %v271_v19 = vadd.f32 %v270_v16, %v269_v15  ;;  %v244_v20 = vrot.slane %v243_v18, 4  ;;  %v322_v35 = vrot.slane %v321_v24, 2 }
 0x11b   : > { %v282_v21 = vpop.xlane.xlu1 %281 }
 0x11c   : > { %v245_v22 = vadd.f32 %v244_v20, %v243_v18  ;;  %v283_v23 = vrot.slane %v282_v21, 4  ;;  %v272_v25 = vrot.slane %v271_v19, 2  ;;  %v323_v57 = vadd.f32 %v322_v35, %v321_v24 }
 0x11d   : > { %v256_v26 = vpop.xlane.xlu0 %255  ;;  %v1530_v20 = vstv %s1440_s23  ;;  %v1547_v24 = vstv %s1448_s25  ;;  %s562_s23 = smul.f32 %s1476_s18, %s1512_s29  ;;  %s1581_s25 = sld [smem:[#allocation2 + $0x8]]  ;;  %v1592_v35 = vstv %s1466_s8 }
 0x11e   : > { %v246_v27 = vrot.slane %v245_v22, 2  ;;  %v284_v28 = vadd.f32 %v283_v23, %v282_v21  ;;  %v257_v29 = vrot.slane %v256_v26, 4  ;;  %v273_v37 = vadd.f32 %v272_v25, %v271_v19  ;;  %s629_s8 = smul.f32 %s1480_s10, %s1535_s12 }
 0x11f   : > { %v308_v30 = vpop.xlane.xlu1 %307  ;;  %v324_v5 = vrot.slane %v323_v57, 1  ;;  %v1527_v19 = vstv %s1438_s20  ;;  %v1538_v21 = vstv %s1442_s7  ;;  %v1544_v23 = vstv %s1446_s17  ;;  %s1549_s20 = sld [smem:[#allocation2 + $0x2b]]  ;;  %s1565_s7 = sld [smem:[#allocation2 + $0x2c]] }
 0x120   : > { %v285_v31 = vrot.slane %v284_v28, 2  ;;  %v258_v32 = vadd.f32 %v257_v29, %v256_v26  ;;  %v309_v33 = vrot.slane %v308_v30, 4  ;;  %v247_v34 = vadd.f32 %v246_v27, %v245_v22  ;;  %s575_s17 = smul.f32 %s1478_s11, %s1512_s29 }
 0x121   : > { %v295_v36 = vpop.xlane.xlu0 %294  ;;  %v274_v50 = vrot.slane %v273_v37, 1  ;;  %v325_v15 = vadd.f32 %v324_v5, %v323_v57  ;;  %v1541_v22 = vstv %s1444_s16  ;;  %v1554_v25 = vstv %s1450_s26  ;;  %s2111_s16 = sld [smem:[#allocation29_spill]]  ;;  %s588_s26 = smul.f32 %s1480_s10, %s1512_s29 }
 0x122   : > { %v259_v38 = vrot.slane %v258_v32, 2  ;;  %v310_v39 = vadd.f32 %v309_v33, %v308_v30  ;;  %v296_v40 = vrot.slane %v295_v36, 4  ;;  %v248_v41 = vrot.slane %v247_v34, 1  ;;  %s1744_s29 = sld [smem:[#allocation2 + $0x2d]] }
 0x123   : > { %v330_v42 = vpop.xlane.xlu1 %329  ;;  %v286_v43 = vadd.f32 %v285_v31, %v284_v28  ;;  %v275_v8 = vadd.f32 %v274_v50, %v273_v37  ;;  %v1557_v26 = vstv %s1452_s27  ;;  %v1560_v27 = vstv %s1454_s30  ;;  %s1597_s27 = sld [smem:[#allocation2 + $0x9]]  ;;  %s2112_s30 = sld [smem:[#allocation38_spill]] }
 0x124   : > { %v311_v44 = vrot.slane %v310_v39, 2  ;;  %v297_v45 = vadd.f32 %v296_v40, %v295_v36  ;;  %v331_v46 = vrot.slane %v330_v42, 4  ;;  %v249_v47 = vadd.f32 %v248_v41, %v247_v34 }
 0x125   : > { %v341_v48 = vpop.xlane.xlu0 %340  ;;  %v260_v49 = vadd.f32 %v259_v38, %v258_v32  ;;  %v287_v63 = vrot.slane %v286_v43, 1  ;;  %v1563_v28 = vstv %s1456_s28  ;;  %v1570_v29 = vstv %s1460_s4  ;;  %s603_s28 = smul.f32 %s1476_s18, %s1535_s12  ;;  %s1601_s4 = sld [smem:[#allocation2 + $0xa]] }
 0x126   : > { %v298_v58 = vrot.slane %v297_v45, 2  ;;  %v332_v59 = vadd.f32 %v331_v46, %v330_v42  ;;  %v342_v60 = vrot.slane %v341_v48, 4  ;;  %1004 = vpush %v249_v47  ;;  %v312_v61 = vadd.f32 %v311_v44, %v310_v39 }
 0x127   : > { %v261_v62 = vrot.slane %v260_v49, 1  ;;  %v288_v10 = vadd.f32 %v287_v63, %v286_v43  ;;  %v1573_v30 = vstv %s1458_s3  ;;  %v1576_v31 = vstv %s1464_s6  ;;  %s2113_s3 = sld [smem:[#allocation39_spill]]  ;;  %s2115_s6 = smul.f32 %s1476_s18, %s1499_s13 }
 0x128   : > { %v333_v0 = vrot.slane %v332_v59, 2  ;;  %v343_v1 = vadd.f32 %v342_v60, %v341_v48  ;;  %v299_v2 = vadd.f32 %v298_v58, %v297_v45  ;;  %v313_v4 = vrot.slane %v312_v61, 1 }
 0x129   : > { %v262_v3 = vadd.f32 %v261_v62, %v260_v49  ;;  %v1579_v32 = vstv %s1462_s5  ;;  %v1586_v33 = vstv %s1468_s24  ;;  %v1589_v34 = vstv %s1470_s19  ;;  %s616_s19 = smul.f32 %s1478_s11, %s1535_s12  ;;  %s1617_s5 = sld [smem:[#allocation2 + $0xb]] }
 0x12a   : > { %v334_v6 = vadd.f32 %v333_v0, %v332_v59  ;;  %v344_v7 = vrot.slane %v343_v1, 2  ;;  %v300_v9 = vrot.slane %v299_v2, 1  ;;  %v314_v14 = vadd.f32 %v313_v4, %v312_v61  ;;  %s2116_s24 = smul.f32 %s1480_s10, %s1499_s13  ;;  %s2123_s12 = sld [smem:[#allocation37_spill]] }
 0x12b   : > { %1006 = vpush %v262_v3  ;;  %v1595_v36 = vstv %s2110_s21  ;;  %v1604_v37 = vstv %s1476_s18  ;;  %v1607_v38 = vstv %s2111_s16  ;;  %v1610_v39 = vstv %s1478_s11  ;;  %s2114_s21 = sld [smem:[#allocation40_spill]]  ;;  %s2117_s16 = sld [smem:[#allocation30_spill]] }
 0x12c   : > { %v345_v11 = vadd.f32 %v344_v7, %v343_v1  ;;  %1008 = vpush %v275_v8  ;;  %v301_v12 = vadd.f32 %v300_v9, %v299_v2  ;;  %v335_v13 = vrot.slane %v334_v6, 1  ;;  %v1613_v40 = vstv %s1480_s10  ;;  %s2121_s10 = sld [smem:[#allocation34_spill]]  ;;  %s2124_s13 = sld [smem:[#allocation32_spill]] }
 0x12d   : > { %1010 = vpush %v288_v10  ;;  %v1622_v41 = vstv %s2115_s6  ;;  %v1627_v42 = vstv %s533_s9  ;;  %v1630_v43 = vstv %s1482_s15  ;;  %v1633_v44 = vstv %s1486_s22  ;;  %s2118_s9 = sld [smem:[#allocation33_spill]]  ;;  %s2119_s6 = sld [smem:[#allocation36_spill]] }
 0x12e   : > { %1012 = vpush %v301_v12  ;;  %v336_v16 = vadd.f32 %v335_v13, %v334_v6  ;;  %v346_v17 = vrot.slane %v345_v11, 1  ;;  %v1640_v45 = vstv %s2116_s24  ;;  %v1645_v46 = vstv %s562_s23  ;;  %s2120_s15 = sld [smem:[#allocation31_spill]]  ;;  %s2127_s18 = sld [smem:[#allocation35_spill]] }
 0x12f   : > { %1014 = vpush %v314_v14  ;;  %v1648_v47 = vstv %s2112_s30  ;;  %v1651_v48 = vstv %s2113_s3  ;;  %v1653_v49 = vstv %s575_s17  ;;  %v1655_v50 = vstv %s588_s26  ;;  %s1821_s17 = sld [smem:[#allocation2 + $0x2e]]  ;;  %s2173_s30 = sld [smem:[#allocation20_spill]] }
 0x130   : > { %1016 = vpush %v325_v15  ;;  %v347_v18 = vadd.f32 %v346_v17, %v345_v11  ;;  %v1658_v57 = vstv %s1509_s14  ;;  %v1664_v59 = vstv %s1518_s0  ;;  %v1667_v60 = vstv %s1522_s2  ;;  %s2171_s26 = sld [smem:[#allocation15_spill]]  ;;  %s2176_s24 = sld [smem:[#allocation63_spill]] }
 0x131   : > { %1018 = vpush %v336_v16  ;;  %2122 = vst [vmem:[#allocation41_spill] sm:$0xff] %v1658_v57  ;;  %v1661_v58 = vstv %s2114_s21  ;;  %v1670_v61 = vstv %s1532_s1  ;;  %v1673_v62 = vstv %s1549_s20  ;;  %v1675_v63 = vstv %s603_s28 }
 0x132   : > { %1020 = vpush %v347_v18  ;;  %2125 = vst [vmem:[#allocation42_spill] sm:$0xff] %v1664_v59  ;;  %v1677_v0 = vstv %s616_s19  ;;  %v1679_v1 = vstv %s629_s8  ;;  %v1682_v2 = vstv %s1565_s7  ;;  %v1685_v4 = vstv %s2117_s16  ;;  %s2175_s19 = sld [smem:[#allocation18_spill]] }
 0x133   : > { %2126 = vst [vmem:[#allocation43_spill] sm:$0xff] %v1667_v60  ;;  %2128 = vst [vmem:[#allocation44_spill] sm:$0xff] %v1670_v61  ;;  %v1688_v5 = vstv %s2118_s9  ;;  %v1691_v6 = vstv %s2119_s6  ;;  %v1697_v8 = vstv %s2121_s10  ;;  %v1700_v9 = vstv %s2123_s12  ;;  %s1229_s6 = smov [#allocation7]  }
 0x134   : > { %2129 = vst [vmem:[#allocation45_spill] sm:$0xff] %v1673_v62  ;;  %2130 = vst [vmem:[#allocation46_spill] sm:$0xff] %v1677_v0  ;;  %v1694_v7 = vstv %s2120_s15  ;;  %v1703_v10 = vstv %s2124_s13  ;;  %v1706_v11 = vstv %s2127_s18  ;;  %v1709_v12 = vstv %s1581_s25  ;;  %s1823_s25 = sld [smem:[#allocation2 + $0x2f]]  ;;  %s1156_s15 = sshll.u32 %s1229_s6, 4  ;;  %s1157_s15 = int_to_ptr.vmem [resolvable:$false] %s1156_s15 }
 0x135   : > { %2131 = vst [vmem:[#allocation47_spill] sm:$0xff] %v1679_v1  ;;  %2132 = vst [vmem:[#allocation48_spill] sm:$0xff] %v1682_v2  ;;  %v1712_v13 = vstv %s1597_s27  ;;  %v1715_v14 = vstv %s1601_s4  ;;  %v1720_v18 = vstv %s1617_s5  ;;  %s2172_s27 = sld [smem:[#allocation21_spill]]  ;;  %s2174_s3 = smul.u32 48, %s2173_s30 }
 0x136   : > { %2133 = vst [vmem:[#allocation49_spill] sm:$0xff] %v1685_v4  ;;  %2134 = vst [vmem:[#allocation50_spill] sm:$0xff] %v1688_v5  ;;  %s1022_s28 = smul.u32 768, %s2171_s26  ;;  %s836_s9 = scalar_lea.sflag [#allocation4], %s2173_s30 }
 0x137   : > { %2135 = vst [vmem:[#allocation51_spill] sm:$0xff] %v1691_v6  ;;  %2136 = vst [vmem:[#allocation52_spill] sm:$0xff] %v1694_v7  ;;  %s175_s4 = scalar_lea.vmem [#allocation7], %s2174_s3  ;;  %s1158_s10 = scalar_lea.vmem %s1157_s15, 1536 }
 0x138   : > { %2137 = vst [vmem:[#allocation53_spill] sm:$0xff] %v1697_v8  ;;  %2138 = vst [vmem:[#allocation54_spill] sm:$0xff] %v1700_v9  ;;  %s849_s21 = sshll.u32 %s175_s4, 4  ;;  %s1965_s16 = scalar_lea.hbm %s2176_s24, %s1022_s28  ;;  %s1968_s21 = int_to_ptr.vmem [resolvable:$true] %s849_s21 }
 0x139   : > { %2139 = vst [vmem:[#allocation55_spill] sm:$0xff] %v1703_v10  ;;  %2140 = vst [vmem:[#allocation56_spill] sm:$0xff] %v1706_v11  ;;  %p2177_p3 = scmp.ne.s32.totalorder %s2175_s19, 0  ;;  %p1159_p10 = scmp.lt.s32.totalorder %s1968_s21, %s1157_s15 }
 0x13a   : > { %2141 = vst [vmem:[#allocation57_spill] sm:$0xff] %v1709_v12  ;;  %2142 = vst [vmem:[#allocation58_spill] sm:$0xff] %v1712_v13 }
 0x13b   : > { %2143 = vst [vmem:[#allocation59_spill] sm:$0xff] %v1715_v14  ;;  %2144 = vst [vmem:[#allocation60_spill] sm:$0xff] %v1720_v18 }
 0x157   : > { %s1005_s11 = spop %1004 }
 0x158   : > { %v251_v3 = vstv %s1005_s11  ;;  %s1152_s11 = scalar_lea.vmem %s1968_s21, 768 }
 0x159   : > { %v452_v15 = vmul.f32 %v1527_v19, %v251_v3  ;;  %v470_v16 = vmul.f32 %v1530_v20, %v251_v3  ;;  %v488_v12 = vmul.f32 %v1538_v21, %v251_v3  ;;  %p1153_p13 = scmp.ne.s32.totalorder %s1968_s21, %s1152_s11  ;;  %p1160_p1 = scmp.lt.s32.totalorder %s1158_s10, %s1152_s11 }
 0x15b   : > { %p1154_p8 = pnand %p1153_p13, %p2177_p3  ;;  %p1161_p4 = por %p1160_p1, %p1159_p10 }
 0x15c   : > { %s1007_s0 = spop %1006 }
 0x15d   : > { %v264_v17 = vstv %s1007_s0  ;;  %s1009_s1 = spop %1008  ;;  %p1155_p9 = pneg %p1154_p8 }
 0x15e   : > { %v277_v55 = vstv %s1009_s1  ;;  %s1011_s2 = spop %1010  ;;  %v454_v52 = vmul.f32 %v1541_v22, %v264_v17  ;;  %v458_v56 = vmul.f32 %v1527_v19, %v264_v17  ;;  %v472_v53 = vmul.f32 %v1544_v23, %v264_v17 }
 0x15f   : > { %v290_v54 = vstv %s1011_s2  ;;  %v476_v51 = vmul.f32 %v1530_v20, %v264_v17  ;;  %v490_v14 = vmul.f32 %v1547_v24, %v264_v17  ;;  %v494_v13 = vmul.f32 %v1538_v21, %v264_v17  ;;  %s1013_s22 = spop %1012  ;;  %p1162_p11 = pnand %p1161_p4, %p1155_p9 }
 0x160   : > { %v455_v9 = vadd.f32 %v454_v52, %v452_v15  ;;  %v460_v18 = vmul.f32 %v1541_v22, %v290_v54  ;;  %v478_v11 = vmul.f32 %v1544_v23, %v290_v54  ;;  %s1015_s14 = spop %1014  ;;  %v473_v10 = vadd.f32 %v472_v53, %v470_v16 }
 0x161   : > { %v496_v6 = vmul.f32 %v1547_v24, %v290_v54  ;;  %v303_v8 = vstv %s1013_s22  ;;  %v316_v7 = vstv %s1015_s14  ;;  %v491_v4 = vadd.f32 %v490_v14, %v488_v12  ;;  %s1017_s20 = spop %1016 }
 0x162   : > { %v461_v5 = vadd.f32 %v460_v18, %v458_v56  ;;  %v456_v2 = vmul.f32 %v1554_v25, %v277_v55  ;;  %v462_v17 = vmul.f32 %v1554_v25, %v303_v8  ;;  %v479_v62 = vadd.f32 %v478_v11, %v476_v51  ;;  %s1019_s23 = spop %1018 }
 0x163   : > { %v497_v61 = vadd.f32 %v496_v6, %v494_v13  ;;  %v464_v52 = vmul.f32 %v1527_v19, %v277_v55  ;;  %v466_v3 = vmul.f32 %v1541_v22, %v303_v8  ;;  %v468_v60 = vmul.f32 %v1554_v25, %v316_v7  ;;  %s1021_s7 = spop %1020 }
 0x164   : > { %v457_v15 = vadd.f32 %v456_v2, %v455_v9  ;;  %v474_v53 = vmul.f32 %v1557_v26, %v277_v55  ;;  %v480_v54 = vmul.f32 %v1557_v26, %v303_v8  ;;  %v463_v16 = vadd.f32 %v462_v17, %v461_v5 }
 0x165   : > { %v467_v56 = vadd.f32 %v466_v3, %v464_v52  ;;  %v482_v12 = vmul.f32 %v1530_v20, %v277_v55  ;;  %v484_v14 = vmul.f32 %v1544_v23, %v303_v8  ;;  %v486_v51 = vmul.f32 %v1557_v26, %v316_v7 }
 0x166   : > { %v475_v18 = vadd.f32 %v474_v53, %v473_v10  ;;  %v492_v6 = vmul.f32 %v1560_v27, %v277_v55  ;;  %v498_v11 = vmul.f32 %v1560_v27, %v303_v8  ;;  %v500_v13 = vmul.f32 %v1538_v21, %v277_v55 }
 0x167   : > { %v469_v2 = vadd.f32 %v468_v60, %v467_v56  ;;  %v485_v9 = vadd.f32 %v484_v14, %v482_v12  ;;  %v502_v5 = vmul.f32 %v1547_v24, %v303_v8  ;;  %v481_v17 = vadd.f32 %v480_v54, %v479_v62 }
 0x168   : > { %v493_v52 = vadd.f32 %v492_v6, %v491_v4  ;;  %v499_v3 = vadd.f32 %v498_v11, %v497_v61  ;;  %v504_v57 = vmul.f32 %v1560_v27, %v316_v7  ;;  %v506_v1 = vmul.f32 %v457_v15, %v1563_v28 }
 0x169   : > { %v487_v10 = vadd.f32 %v486_v51, %v485_v9  ;;  %v503_v53 = vadd.f32 %v502_v5, %v500_v13  ;;  %v508_v0 = vmul.f32 %v463_v16, %v1570_v29  ;;  %v510_v59 = vmul.f32 %v469_v2, %v1586_v33 }
 0x16a   : > { %v522_v60 = vmul.f32 %v457_v15, %v1573_v30  ;;  %v524_v56 = vmul.f32 %v463_v16, %v1576_v31  ;;  %v526_v55 = vmul.f32 %v469_v2, %v1589_v34  ;;  %v536_v61 = vmul.f32 %v457_v15, %v1579_v32 }
 0x16b   : > { %v505_v62 = vadd.f32 %v504_v57, %v503_v53  ;;  %v509_v4 = vadd.f32 %v508_v0, %v506_v1  ;;  %v538_v7 = vmul.f32 %v463_v16, %v1592_v35  ;;  %v540_v54 = vmul.f32 %v469_v2, %v1595_v36 }
 0x16c   : > { %v525_v8 = vadd.f32 %v524_v56, %v522_v60  ;;  %v550_v12 = vmul.f32 %v475_v18, %v1563_v28  ;;  %v552_v14 = vmul.f32 %v481_v17, %v1570_v29  ;;  %v554_v6 = vmul.f32 %v487_v10, %v1586_v33 }
 0x16d   : > { %v539_v51 = vadd.f32 %v538_v7, %v536_v61  ;;  %v565_v11 = vmul.f32 %v475_v18, %v1573_v30  ;;  %v567_v9 = vmul.f32 %v481_v17, %v1576_v31  ;;  %v1763_v57 = vadd.f32 %v510_v59, %v509_v4 }
 0x16e   : > { %v553_v0 = vadd.f32 %v552_v14, %v550_v12  ;;  %v569_v1 = vmul.f32 %v487_v10, %v1589_v34  ;;  %v767_v15 = vstv %s1744_s29  ;;  %v578_v2 = vmul.f32 %v475_v18, %v1579_v32 }
 0x16f   : > { %v568_v16 = vadd.f32 %v567_v9, %v565_v11  ;;  %v580_v13 = vmul.f32 %v481_v17, %v1592_v35  ;;  %v582_v5 = vmul.f32 %v487_v10, %v1595_v36  ;;  %v1770_v53 = vadd.f32 %v526_v55, %v525_v8 }
 0x170   : > { %v591_v60 = vmul.f32 %v493_v52, %v1563_v28  ;;  %v593_v56 = vmul.f32 %v499_v3, %v1570_v29  ;;  %v595_v59 = vmul.f32 %v505_v62, %v1586_v33  ;;  %v541_v4 = vadd.f32 %v540_v54, %v539_v51 }
 0x171   : > { %v555_v61 = vadd.f32 %v554_v6, %v553_v0  ;;  %v581_v7 = vadd.f32 %v580_v13, %v578_v2  ;;  %v608_v12 = vmul.f32 %v499_v3, %v1576_v31  ;;  %v606_v18 = vmul.f32 %v493_v52, %v1573_v30 }
 0x172   : > { %v594_v14 = vadd.f32 %v593_v56, %v591_v60  ;;  %v619_v17 = vmul.f32 %v493_v52, %v1579_v32  ;;  %v621_v10 = vmul.f32 %v499_v3, %v1592_v35  ;;  %v1779_v55 = vadd.f32 %v569_v1, %v568_v16 }
 0x173   : > { %v1781_v8 = vadd.f32 %v582_v5, %v581_v7  ;;  %v610_v11 = vmul.f32 %v505_v62, %v1589_v34  ;;  %v327_v9 = vstv %s1017_s20  ;;  %v609_v51 = vadd.f32 %v608_v12, %v606_v18 }
 0x174   : > { %v1784_v54 = vadd.f32 %v595_v59, %v594_v14  ;;  %v622_v6 = vadd.f32 %v621_v10, %v619_v17  ;;  %v623_v0 = vmul.f32 %v505_v62, %v1595_v36  ;;  %v399_v2 = vmul.f32 %v1527_v19, %v327_v9 }
 0x175   : > { %v408_v52 = vmul.f32 %v1530_v20, %v327_v9  ;;  %v417_v3 = vmul.f32 %v1538_v21, %v327_v9  ;;  %v426_v1 = vmul.f32 %v1563_v28, %v327_v9  ;;  %v435_v16 = vmul.f32 %v1573_v30, %v327_v9 }
 0x176   : > { %v444_v13 = vmul.f32 %v1579_v32, %v327_v9  ;;  %v338_v5 = vstv %s1019_s23  ;;  %v349_v60 = vstv %s1021_s7  ;;  %v611_v10 = vadd.f32 %v610_v11, %v609_v51 }
 0x177   : > { %v402_v56 = vmul.f32 %v1541_v22, %v338_v5  ;;  %v411_v59 = vmul.f32 %v1544_v23, %v338_v5  ;;  %v420_v62 = vmul.f32 %v1547_v24, %v338_v5  ;;  %v429_v19 = vmul.f32 %v1570_v29, %v338_v5 }
 0x178   : > { %v438_v20 = vmul.f32 %v1576_v31, %v338_v5  ;;  %v447_v21 = vmul.f32 %v1592_v35, %v338_v5  ;;  %v405_v28 = vmul.f32 %v1554_v25, %v349_v60  ;;  %v414_v30 = vmul.f32 %v1557_v26, %v349_v60 }
 0x179   : > { %v403_v7 = vadd.f32 %v402_v56, %v399_v2  ;;  %v412_v32 = vadd.f32 %v411_v59, %v408_v52  ;;  %v421_v12 = vadd.f32 %v420_v62, %v417_v3  ;;  %v430_v14 = vadd.f32 %v429_v19, %v426_v1 }
 0x17a   : > { %v439_v18 = vadd.f32 %v438_v20, %v435_v16  ;;  %v448_v22 = vadd.f32 %v447_v21, %v444_v13  ;;  %v423_v23 = vmul.f32 %v1560_v27, %v349_v60  ;;  %v432_v24 = vmul.f32 %v1586_v33, %v349_v60 }
 0x17b   : > { %v406_v17 = vadd.f32 %v405_v28, %v403_v7  ;;  %v415_v29 = vadd.f32 %v414_v30, %v412_v32  ;;  %v441_v31 = vmul.f32 %v1589_v34, %v349_v60  ;;  %v450_v35 = vmul.f32 %v1595_v36, %v349_v60 }
 0x17c   : > { %v624_v25 = vadd.f32 %v623_v0, %v622_v6  ;;  %v424_v9 = vadd.f32 %v423_v23, %v421_v12  ;;  %v433_v26 = vadd.f32 %v432_v24, %v430_v14 }
 0x17d   : > { %v442_v2 = vadd.f32 %v441_v31, %v439_v18  ;;  %v451_v52 = vadd.f32 %v450_v35, %v448_v22  ;;  %v513_v3 = vmul.f32 %v1604_v37, %v406_v17  ;;  %v529_v1 = vmul.f32 %v1610_v39, %v406_v17 }
 0x17e   : > { %v516_v27 = vmul.f32 %v1607_v38, %v433_v26  ;;  %v543_v33 = vmul.f32 %v1613_v40, %v406_v17  ;;  %v556_v16 = vmul.f32 %v1604_v37, %v415_v29  ;;  %v559_v34 = vmul.f32 %v1630_v43, %v433_v26 }
 0x17f   : > { %v514_v36 = vadd.f32 %v513_v3, %v1763_v57  ;;  %v530_v11 = vadd.f32 %v529_v1, %v1770_v53  ;;  %v531_v51 = vmul.f32 %v1607_v38, %v442_v2  ;;  %v545_v6 = vmul.f32 %v1607_v38, %v451_v52 }
 0x180   : > { %v544_v0 = vadd.f32 %v543_v33, %v541_v4  ;;  %v557_v13 = vadd.f32 %v556_v16, %v555_v61  ;;  %v571_v5 = vmul.f32 %v1610_v39, %v415_v29  ;;  %v573_v60 = vmul.f32 %v1630_v43, %v442_v2 }
 0x181   : > { %v517_v56 = vadd.f32 %v516_v27, %v514_v36  ;;  %v532_v59 = vadd.f32 %v531_v51, %v530_v11  ;;  %v584_v62 = vmul.f32 %v1613_v40, %v415_v29  ;;  %v586_v19 = vmul.f32 %v1630_v43, %v451_v52  ;;  %v2149_v36 = vld [vmem:[#allocation43_spill] sm:$0xff] }
 0x182   : > { %v546_v20 = vadd.f32 %v545_v6, %v544_v0  ;;  %v560_v57 = vadd.f32 %v559_v34, %v557_v13  ;;  %v572_v53 = vadd.f32 %v571_v5, %v1779_v55  ;;  %v597_v21 = vmul.f32 %v1604_v37, %v424_v9 }
 0x183   : > { %v521_v38 = vadd.f32 %v1622_v41, %v517_v56  ;;  %v535_v4 = vadd.f32 %v1627_v42, %v532_v59  ;;  %v585_v61 = vadd.f32 %v584_v62, %v1781_v8  ;;  %v600_v28 = vmul.f32 %v1633_v44, %v433_v26  ;;  %v2150_v59 = vld [vmem:[#allocation44_spill] sm:$0xff] }
 0x184   : > { %v549_v43 = vadd.f32 %v1640_v45, %v546_v20  ;;  %v564_v30 = vadd.f32 %v1645_v46, %v560_v57  ;;  %v574_v7 = vadd.f32 %v573_v60, %v572_v53  ;;  %v598_v55 = vadd.f32 %v597_v21, %v1784_v54 }
 0x185   : > { %v587_v37 = vadd.f32 %v586_v19, %v585_v61  ;;  %v612_v32 = vmul.f32 %v1610_v39, %v424_v9  ;;  %v614_v12 = vmul.f32 %v1633_v44, %v442_v2  ;;  %v625_v41 = vmul.f32 %v1613_v40, %v424_v9  ;;  %v2146_v9 = vld [vmem:[#allocation46_spill] sm:$0xff]  ;;  %v2151_v19 = vld [vmem:[#allocation45_spill] sm:$0xff] }
 0x186   : > { %v577_v42 = vadd.f32 %v1653_v49, %v574_v7  ;;  %v601_v14 = vadd.f32 %v600_v28, %v598_v55  ;;  %v627_v8 = vmul.f32 %v1633_v44, %v451_v52  ;;  %v633_v45 = vmul.f32 %v1648_v47, %v521_v38  ;;  %v2148_v52 = vld [vmem:[#allocation41_spill] sm:$0xff] }
 0x187   : > { %v590_v46 = vadd.f32 %v1655_v50, %v587_v37  ;;  %v613_v18 = vadd.f32 %v612_v32, %v611_v10  ;;  %v626_v54 = vadd.f32 %v625_v41, %v624_v25  ;;  %v636_v22 = vmul.f32 %v1651_v48, %v564_v30  ;;  %v2145_v50 = vld [vmem:[#allocation42_spill] sm:$0xff]  ;;  %v2152_v37 = vld [vmem:[#allocation48_spill] sm:$0xff] }
 0x188   : > { %v605_v39 = vadd.f32 %v1675_v63, %v601_v14  ;;  %v641_v23 = vmul.f32 %v1648_v47, %v535_v4  ;;  %v643_v40 = vmul.f32 %v1651_v48, %v577_v42  ;;  %v647_v49 = vmul.f32 %v1648_v47, %v549_v43  ;;  %v2147_v63 = vld [vmem:[#allocation47_spill] sm:$0xff] }
 0x189   : > { %v615_v24 = vadd.f32 %v614_v12, %v613_v18  ;;  %v628_v44 = vadd.f32 %v627_v8, %v626_v54  ;;  %v637_v17 = vadd.f32 %v636_v22, %v633_v45  ;;  %v649_v29 = vmul.f32 %v1651_v48, %v590_v46 }
 0x18a   : > { %v654_v31 = vmul.f32 %v1661_v58, %v521_v38  ;;  %v657_v35 = vmul.f32 %v2145_v50, %v564_v30  ;;  %v775_v10 = vstv %s1821_s17  ;;  %v783_v25 = vstv %s1823_s25 }
 0x18b   : > { %v618_v26 = vadd.f32 %v2146_v9, %v615_v24  ;;  %v631_v2 = vadd.f32 %v2147_v63, %v628_v44  ;;  %v639_v3 = vmul.f32 %v2148_v52, %v605_v39  ;;  %v644_v1 = vadd.f32 %v643_v40, %v641_v23  ;;  %v2158_v24 = vld [vmem:[#allocation55_spill] sm:$0xff] }
 0x18c   : > { %v650_v27 = vadd.f32 %v649_v29, %v647_v49  ;;  %v658_v47 = vadd.f32 %v657_v35, %v654_v31  ;;  %v662_v33 = vmul.f32 %v1661_v58, %v535_v4  ;;  %v664_v16 = vmul.f32 %v2145_v50, %v577_v42  ;;  %v2160_v35 = vld [vmem:[#allocation54_spill] sm:$0xff] }
 0x18d   : > { %v1854_v48 = vadd.f32 %v639_v3, %v637_v17  ;;  %v645_v34 = vmul.f32 %v2148_v52, %v618_v26  ;;  %v660_v11 = vmul.f32 %v2149_v36, %v605_v39  ;;  %v668_v51 = vmul.f32 %v1661_v58, %v549_v43  ;;  %v2159_v17 = vld [vmem:[#allocation56_spill] sm:$0xff] }
 0x18e   : > { %v651_v6 = vmul.f32 %v2148_v52, %v631_v2  ;;  %v665_v0 = vadd.f32 %v664_v16, %v662_v33  ;;  %v666_v13 = vmul.f32 %v2149_v36, %v618_v26  ;;  %v670_v5 = vmul.f32 %v2145_v50, %v590_v46  ;;  %v2161_v52 = vld [vmem:[#allocation57_spill] sm:$0xff] }
 0x18f   : > { %v1862_v60 = vadd.f32 %v645_v34, %v644_v1  ;;  %v1864_v56 = vadd.f32 %v660_v11, %v658_v47  ;;  %v675_v62 = vmul.f32 %v2150_v59, %v521_v38  ;;  %v678_v20 = vmul.f32 %v2151_v19, %v564_v30  ;;  %v2153_v30 = vld [vmem:[#allocation49_spill] sm:$0xff] }
 0x190   : > { %v1868_v57 = vadd.f32 %v651_v6, %v650_v27  ;;  %v671_v53 = vadd.f32 %v670_v5, %v668_v51  ;;  %v672_v58 = vmul.f32 %v2149_v36, %v631_v2  ;;  %v683_v21 = vmul.f32 %v2150_v59, %v535_v4  ;;  %v2154_v4 = vld [vmem:[#allocation50_spill] sm:$0xff] }
 0x191   : > { %v667_v61 = vadd.f32 %v666_v13, %v665_v0  ;;  %v679_v28 = vadd.f32 %v678_v20, %v675_v62  ;;  %v685_v7 = vmul.f32 %v2151_v19, %v577_v42  ;;  %v689_v55 = vmul.f32 %v2150_v59, %v549_v43  ;;  %v2155_v43 = vld [vmem:[#allocation52_spill] sm:$0xff] }
 0x192   : > { %v681_v32 = vmul.f32 %v2152_v37, %v605_v39  ;;  %v687_v12 = vmul.f32 %v2152_v37, %v618_v26  ;;  %v691_v38 = vmul.f32 %v2151_v19, %v590_v46  ;;  %v696_v41 = vmul.f32 %v2153_v30, %v1854_v48  ;;  %v2156_v39 = vld [vmem:[#allocation53_spill] sm:$0xff]  ;;  %v2157_v46 = vld [vmem:[#allocation51_spill] sm:$0xff] }
 0x193   : > { %v673_v14 = vadd.f32 %v672_v58, %v671_v53  ;;  %v686_v8 = vadd.f32 %v685_v7, %v683_v21  ;;  %v693_v45 = vmul.f32 %v2152_v37, %v631_v2  ;;  %v699_v18 = vmul.f32 %v2154_v4, %v1862_v60 }
 0x194   : > { %v682_v54 = vadd.f32 %v681_v32, %v679_v28  ;;  %v692_v42 = vadd.f32 %v691_v38, %v689_v55  ;;  %v705_v22 = vmul.f32 %v2155_v43, %v1854_v48  ;;  %v708_v23 = vmul.f32 %v2156_v39, %v1862_v60 }
 0x195   : > { %v700_v40 = vadd.f32 %v699_v18, %v696_v41  ;;  %v702_v49 = vmul.f32 %v2157_v46, %v1868_v57  ;;  %v714_v44 = vmul.f32 %v2158_v24, %v1854_v48  ;;  %v717_v29 = vmul.f32 %v2159_v17, %v1862_v60 }
 0x196   : > { %v688_v31 = vadd.f32 %v687_v12, %v686_v8  ;;  %v709_v50 = vadd.f32 %v708_v23, %v705_v22  ;;  %v711_v9 = vmul.f32 %v2160_v35, %v1868_v57  ;;  %v722_v26 = vmul.f32 %v2153_v30, %v1864_v56  ;;  %v2163_v8 = vld [vmem:[#allocation59_spill] sm:$0xff]  ;;  %v2164_v23 = vld [vmem:[#allocation60_spill] sm:$0xff] }
 0x197   : > { %v694_v63 = vadd.f32 %v693_v45, %v692_v42  ;;  %v718_v2 = vadd.f32 %v717_v29, %v714_v44  ;;  %v720_v3 = vmul.f32 %v2161_v52, %v1868_v57  ;;  %v724_v1 = vmul.f32 %v2154_v4, %v667_v61 }
 0x198   : > { %v703_v27 = vadd.f32 %v702_v49, %v700_v40  ;;  %v726_v47 = vmul.f32 %v2157_v46, %v673_v14  ;;  %v728_v33 = vmul.f32 %v2155_v43, %v1864_v56  ;;  %v730_v16 = vmul.f32 %v2156_v39, %v667_v61 }
 0x199   : > { %v712_v34 = vadd.f32 %v711_v9, %v709_v50  ;;  %v725_v36 = vadd.f32 %v724_v1, %v722_v26  ;;  %v734_v11 = vmul.f32 %v2158_v24, %v1864_v56  ;;  %v736_v51 = vmul.f32 %v2159_v17, %v667_v61 }
 0x19a   : > { %v731_v6 = vadd.f32 %v730_v16, %v728_v33  ;;  %v732_v0 = vmul.f32 %v2160_v35, %v673_v14  ;;  %v740_v13 = vmul.f32 %v2153_v30, %v682_v54  ;;  %v742_v5 = vmul.f32 %v2154_v4, %v688_v31  ;;  %v2162_v30 = vld [vmem:[#allocation58_spill] sm:$0xff] }
 0x19b   : > { %v721_v59 = vadd.f32 %v720_v3, %v718_v2  ;;  %v737_v62 = vadd.f32 %v736_v51, %v734_v11  ;;  %v738_v19 = vmul.f32 %v2161_v52, %v673_v14  ;;  %v746_v20 = vmul.f32 %v2155_v43, %v682_v54  ;;  %v2169_v51 = vld [vmem:[#allocation23_spill] sm:$0xff] }
 0x19c   : > { %v727_v53 = vadd.f32 %v726_v47, %v725_v36  ;;  %v743_v58 = vadd.f32 %v742_v5, %v740_v13  ;;  %v744_v21 = vmul.f32 %v2157_v46, %v694_v63  ;;  %v748_v28 = vmul.f32 %v2156_v39, %v688_v31 }
 0x19d   : > { %v733_v7 = vadd.f32 %v732_v0, %v731_v6  ;;  %v750_v55 = vmul.f32 %v2160_v35, %v694_v63  ;;  %v752_v37 = vmul.f32 %v2158_v24, %v682_v54  ;;  %v754_v32 = vmul.f32 %v2159_v17, %v688_v31  ;;  %v2165_v17 = vld [vmem:[#allocation22_spill] sm:$0xff] }
 0x19e   : > { %v739_v12 = vadd.f32 %v738_v19, %v737_v62  ;;  %v749_v38 = vadd.f32 %v748_v28, %v746_v20  ;;  %v759_v41 = vmul.f32 %v2162_v30, %v1854_v48  ;;  %v762_v45 = vmul.f32 %v2163_v8, %v1862_v60  ;;  %v2170_v0 = vld [vmem:[#allocation26_spill] sm:$0xff] }
 0x19f   : > { %v745_v4 = vadd.f32 %v744_v21, %v743_v58  ;;  %v756_v18 = vmul.f32 %v2161_v52, %v694_v63  ;;  %v769_v42 = vmul.f32 %v2162_v30, %v1864_v56  ;;  %v771_v43 = vmul.f32 %v2163_v8, %v667_v61  ;;  %v2166_v56 = vld [vmem:[#allocation25_spill] sm:$0xff]  ;;  %v2167_v61 = vld [vmem:[#allocation24_spill] sm:$0xff] }
 0x1a0   : > { %v755_v22 = vadd.f32 %v754_v32, %v752_v37  ;;  %v763_v39 = vadd.f32 %v762_v45, %v759_v41  ;;  %v765_v40 = vmul.f32 %v2164_v23, %v1868_v57  ;;  %v777_v46 = vmul.f32 %v2162_v30, %v682_v54  ;;  %v2168_v57 = vld [vmem:[#allocation27_spill] sm:$0xff] }
 0x1a1   : > { %v751_v49 = vadd.f32 %v750_v55, %v749_v38  ;;  %v772_v48 = vadd.f32 %v771_v43, %v769_v42  ;;  %v773_v24 = vmul.f32 %v2164_v23, %v673_v14  ;;  %v779_v60 = vmul.f32 %v2163_v8, %v688_v31 }
 0x1a2   : > { %v781_v44 = vmul.f32 %v2164_v23, %v694_v63  ;;  %v785_v29 = vmul.f32 %v703_v27, %v2165_v17  ;;  %v786_v50 = vmul.f32 %v703_v27, %v2166_v56  ;;  %v787_v35 = vmul.f32 %v712_v34, %v2167_v61 }
 0x1a3   : > { %v766_v9 = vadd.f32 %v765_v40, %v763_v39  ;;  %v780_v26 = vadd.f32 %v779_v60, %v777_v46  ;;  %v788_v2 = vmul.f32 %v712_v34, %v2168_v57  ;;  %v801_v54 = vmul.f32 %v727_v53, %v2165_v17  ;;  %v1104_v39 = vld [vmem:[%s2172_s27 + $0x18] sm:$0xff]  ;;  %v1105_v46 = vld [vmem:[%s2172_s27 + $0x20] sm:$0xff] }
 0x1a4   : > { %v802_v52 = vmul.f32 %v727_v53, %v2166_v56  ;;  %v803_v14 = vmul.f32 %v733_v7, %v2167_v61  ;;  %v804_v31 = vmul.f32 %v733_v7, %v2168_v57  ;;  %v818_v63 = vmul.f32 %v745_v4, %v2165_v17 }
 0x1a5   : > { %v757_v3 = vadd.f32 %v756_v18, %v755_v22  ;;  %v819_v1 = vmul.f32 %v745_v4, %v2166_v56  ;;  %v820_v27 = vmul.f32 %v751_v49, %v2167_v61  ;;  %v821_v47 = vmul.f32 %v751_v49, %v2168_v57  ;;  %v1101_v4 = vld [vmem:[%s2172_s27] sm:$0xff]  ;;  %v1103_v22 = vld [vmem:[%s2172_s27 + $0x10] sm:$0xff] }
 0x1a6   : > { %v774_v33 = vadd.f32 %v773_v24, %v772_v48  ;;  %v782_v16 = vadd.f32 %v781_v44, %v780_v26  ;;  %v789_v34 = vadd.f32 %v787_v35, %v785_v29  ;;  %v790_v36 = vadd.f32 %v788_v2, %v786_v50  ;;  %v1106_v48 = vld [vmem:[%s2172_s27 + $0x28] sm:$0xff] }
 0x1a7   : > { %v768_v11 = vadd.f32 %v767_v15, %v766_v9  ;;  %v791_v6 = vmul.f32 %v721_v59, %v2169_v51  ;;  %v792_v13 = vmul.f32 %v721_v59, %v2170_v0  ;;  %v805_v5 = vadd.f32 %v803_v14, %v801_v54 }
 0x1a8   : > { %v806_v62 = vadd.f32 %v804_v31, %v802_v52  ;;  %v807_v19 = vmul.f32 %v739_v12, %v2169_v51  ;;  %v808_v20 = vmul.f32 %v739_v12, %v2170_v0  ;;  %v822_v53 = vadd.f32 %v820_v27, %v818_v63 }
 0x1a9   : > { %v793_v58 = vadd.f32 %v791_v6, %v789_v34  ;;  %v794_v21 = vadd.f32 %v792_v13, %v790_v36  ;;  %v823_v28 = vadd.f32 %v821_v47, %v819_v1  ;;  %v824_v15 = vmul.f32 %v757_v3, %v2169_v51 }
 0x1aa   : > { %v776_v7 = vadd.f32 %v775_v10, %v774_v33  ;;  %v809_v55 = vadd.f32 %v807_v19, %v805_v5  ;;  %v810_v59 = vadd.f32 %v808_v20, %v806_v62  ;;  %v825_v37 = vmul.f32 %v757_v3, %v2170_v0  ;;  %v1102_v10 = vld [vmem:[%s2172_s27 + $0x8] sm:$0xff] }
 0x1ab   : > { %v784_v32 = vadd.f32 %v783_v25, %v782_v16  ;;  %v795_v38 = vadd.f32 %v793_v58, %v768_v11  ;;  %v796_v12 = vadd.f32 %v794_v21, %v768_v11  ;;  %v826_v30 = vadd.f32 %v824_v15, %v822_v53 }
 0x1ac   : > { %v811_v41 = vadd.f32 %v809_v55, %v776_v7  ;;  %v812_v8 = vadd.f32 %v810_v59, %v776_v7  ;;  %v827_v45 = vadd.f32 %v825_v37, %v823_v28 }
 0x1ad   : > { %v797_v18 = vadd.f32 %v1101_v4, %v795_v38  ;;  %v798_v42 = vadd.f32 %v1102_v10, %v796_v12  ;;  %v828_v43 = vadd.f32 %v826_v30, %v784_v32 }
 0x1ae   : > { %v813_v25 = vadd.f32 %v1103_v22, %v811_v41  ;;  %v814_v23 = vadd.f32 %v1104_v39, %v812_v8  ;;  %v829_v40 = vadd.f32 %v827_v45, %v784_v32 }
 0x1af   : > { %799 = vst [vmem:[%s175_s4] sm:$0xff] %v797_v18  ;;  %800 = vst [vmem:[%s175_s4 + $0x8] sm:$0xff] %v798_v42  ;;  %v830_v49 = vadd.f32 %v1105_v46, %v828_v43 }
 0x1b0   : > { %994 = vst [vmem:[%s175_s4 + $0x10] sm:$0xff] %v813_v25  ;;  %995 = vst [vmem:[%s175_s4 + $0x18] sm:$0xff] %v814_v23  ;;  %v831_v24 = vadd.f32 %v1106_v48, %v829_v40 }
 0x1b1   : > { %996 = vst [vmem:[%s175_s4 + $0x20] sm:$0xff] %v830_v49 }
 0x1b2   : > { %997 = vst [vmem:[%s175_s4 + $0x28] sm:$0xff] %v831_v24 }
 0x1b3   : > { %1165 = shalt.err (!%p1162_p11)
}
 0x1b4   : > { %s1166_s12 = scalar_lea.hbm %s1965_s16, 768  ;;  %s1170_s0 = scalar_lea.hbm %s2176_s24, 1536 }
 0x1b5   : > { %p1167_p0 = scmp.ne.s32.totalorder %s1965_s16, %s1166_s12  ;;  %p1171_p5 = scmp.lt.u32.totalorder %s1965_s16, %s2176_s24 }
 0x1b6   : > { %p1172_p12 = scmp.lt.u32.totalorder %s1170_s0, %s1166_s12  ;;  %p1174_p13 = scmp.lt.u32.totalorder %s1166_s12, %s1965_s16 }
 0x1b7   : > { %p1168_p2 = pnand %p1167_p0, %p2177_p3 }
 0x1b8   : > { %p1173_p6 = por %p1172_p12, %p1171_p5 }
 0x1b9   : > { %p1169_p7 = pneg %p1168_p2 }
 0x1ba   : > { %p1175_p8 = por %p1174_p13, %p1173_p6 }
 0x1bc   : > { %p1176_p9 = pnand %p1175_p8, %p1169_p7 }
 0x1be   : > { %1179 = shalt.err (!%p1176_p9)
}
 0x1bf   : > { %s1230_s22 = smov 128   ;;  %s1231_s14 = smov 8  }
 0x1c0   : > { %1029 = dma.vmem_to_hbm [thread:$0]  (%p2177_p3), %s1968_s21, 768, %s1965_s16, %s836_s9, %s1230_s22, %s1230_s22, %s1231_s14  }
 0x1c1 PF: > { %s2178_s29 = sld [smem:[#allocation11_spill]]  ;;  %s2179_s20 = sld [smem:[#allocation19_spill]] }
 0x1c2   : > { %s2180_s23 = sld [smem:[#allocation14_spill]] }
 0x1c7   : > { %s864_s7 = sand.u32 1, %s2178_s29   ;;  %p2181_p10 = scmp.ne.s32.totalorder %s2179_s20, 0 }
 0x1c8   : > { %p2182_p1 = scmp.ge.s32.totalorder %s2180_s23, 2  ;;  %s865_s17 = scalar_lea.sflag [#allocation4], %s864_s7 }
 0x1ca   : > { %p1040_p4 = pnand %p2182_p1, %p2181_p10 }
 0x1cc   : > { %1205 = dma.done.wait (!%p1040_p4), %s865_s17, 768  }
 0x1cd   : > { %1207 = vsyncadd (!%p1040_p4), %s865_s17, 4294966528  ;;  %s2183_s12 = sld [smem:[#allocation16_spill]]  ;;  %s2184_s9 = sld [smem:[#allocation12_spill]] }
 0x1ce   : > { %s2185_s10 = sld [smem:[#allocation13_spill]]  ;;  %s2186_s11 = sld [smem:[#allocation17_spill]] }
 0x1d3   : > { %p16_p11 = scmp.ge.s32.totalorder %s2183_s12, 4  }
 0x1d5   :  { %18 = sbr.rel (!%p16_p11) target bundleno = 10 (0xa), region = 82 }
 0x1dc   :  { %870 = vsyncpa [#allocation3], 1 }
 0x1dd   :  { %872 = vsyncpa [#allocation3 + $0x1], 1 }
 0x1de   :  { %873 = vsyncpa [#allocation4], 1 }
 0x1df   :  { %875 = vsyncpa [#allocation4 + $0x1], 1 }
 0x1e0   :  { %876 = vsyncpa [#allocation5], 1 }
 0x1e1   :  { %878 = vsyncpa [#allocation5 + $0x1], 1 }

</bundles_post_ra>
